<compile_context>
chip_gen: v6e
topology: v6e:2x2x1
jax: 0.10.0
libtpu: 0.0.40
codegen_flags: <defaults>
</compile_context>

<pallas_src>
import jax
import jax.numpy as jnp
from jax import lax
from jax.experimental import pallas as pl
from jax.experimental.pallas import tpu as pltpu

_EPS = 1e-5  # nn.BatchNorm2d default eps


def _taps(stride):
    """tap t = kh*3+kw -> (phase index, row offset, col offset) inside that phase."""
    if stride == 1:
        return [(0, kh, kw) for kh in range(3) for kw in range(3)]
    return [((kh % 2) * 2 + (kw % 2), kh // 2, kw // 2)
            for kh in range(3) for kw in range(3)]


# --------------------------------------------------------------------------- kernels
def _make_conv1_kernel(stride, Ho, Wo, Cin, C1):
    """conv1 (+ fused downsample conv): one big-K bf16 matmul per image + BN partials."""
    taps = _taps(stride)
    n_phase = 1 if stride == 1 else 4
    Mimg = Ho * Wo

    def kernel(*refs):
        ph = refs[:n_phase]                       # padded-input phases, (1,Hp,Wp,Cin) f32
        w_ref = refs[n_phase]                     # (9*Cin, C1) bf16
        y_ref, st_ref = refs[n_phase + 1], refs[n_phase + 2]

        # im2col in registers: 9 shifted taps, cast to bf16, concatenated on lanes.
        pieces = [
            ph[p][:, pl.ds(oh, Ho), pl.ds(ow, Wo), :]
            .reshape(Mimg, Cin).astype(jnp.bfloat16)
            for (p, oh, ow) in taps
        ]
        col = jnp.concatenate(pieces, axis=-1)                        # (Mimg, 9*Cin) bf16
        acc = jnp.dot(col, w_ref[...], preferred_element_type=jnp.float32)  # (Mimg,C1) f32

        y_ref[...] = acc.reshape(1, Mimg, C1)                         # pre-BN conv output
        s = jnp.sum(acc, axis=0, keepdims=True)
        ss = jnp.sum(acc * acc, axis=0, keepdims=True)
        st_ref[...] = jnp.concatenate([s, ss], axis=0).reshape(1, 2, C1)

    return kernel


def _make_conv2_kernel(Ho, Wo, Cout, C1, has_down):
    """BN1 + ReLU + conv2 per image (+ normalized downsample residual) + BN2 partials."""
    Mimg = Ho * Wo

    def kernel(*refs):
        y1_ref, sc_ref, sh_ref, w2_ref = refs[:4]
        if has_down:
            dsc_ref, dsh_ref, y2_ref, st_ref, res_ref, h1p_ref = refs[4:]
        else:
            y2_ref, st_ref, h1p_ref = refs[4:]

        a = y1_ref[...].reshape(Mimg, C1)                             # pre-BN conv1(+down)
        h1 = jnp.maximum(a[:, :Cout] * sc_ref[...] + sh_ref[...], 0.0)

        if has_down:
            # downsample skip branch: BatchNorm only (no ReLU)
            res_ref[...] = (a[:, Cout:] * dsc_ref[...] + dsh_ref[...]).reshape(1, Mimg, Cout)

        # Pad h1 into a VMEM scratch so every conv2 tap is a contiguous slice.
        # Only the 1-pixel halo is zeroed; the interior is fully overwritten.
        zr = jnp.zeros((1, 1, Wo + 2, Cout), jnp.float32)
        zc = jnp.zeros((1, Ho + 2, 1, Cout), jnp.float32)
        h1p_ref[:, 0:1, :, :] = zr
        h1p_ref[:, Ho + 1:Ho + 2, :, :] = zr
        h1p_ref[:, :, 0:1, :] = zc
        h1p_ref[:, :, Wo + 1:Wo + 2, :] = zc
        h1p_ref[:, 1:Ho + 1, 1:Wo + 1, :] = h1.reshape(1, Ho, Wo, Cout)

        pieces = [
            h1p_ref[:, pl.ds(kh, Ho), pl.ds(kw, Wo), :]
            .reshape(Mimg, Cout).astype(jnp.bfloat16)
            for kh in range(3) for kw in range(3)
        ]
        col = jnp.concatenate(pieces, axis=-1)                        # (Mimg, 9*Cout) bf16
        acc = jnp.dot(col, w2_ref[...], preferred_element_type=jnp.float32)

        y2_ref[...] = acc.reshape(1, Mimg, Cout)
        s = jnp.sum(acc, axis=0, keepdims=True)
        ss = jnp.sum(acc * acc, axis=0, keepdims=True)
        st_ref[...] = jnp.concatenate([s, ss], axis=0).reshape(1, 2, Cout)

    return kernel


def _epilogue_kernel(y2_ref, res_ref, sc_ref, sh_ref, out_ref):
    """BN2 + residual add + ReLU, fully lane-dense ([1, Ho, Wo*Cout] blocks)."""
    out_ref[...] = jnp.maximum(
        y2_ref[...] * sc_ref[...] + sh_ref[...] + res_ref[...], 0.0)


# --------------------------------------------------------------------------- wrapper
def _bn_scale_shift(stats, gamma, beta, count):
    """stats: (N, 2, C) per-image [sum; sumsq] partials -> per-channel scale/shift."""
    s = jnp.sum(stats[:, 0, :], axis=0)
    ss = jnp.sum(stats[:, 1, :], axis=0)
    mean = s / count
    var = jnp.maximum(ss / count - mean * mean, 0.0)
    scale = gamma * lax.rsqrt(var + _EPS)
    shift = beta - mean * scale
    return scale, shift


def residual_block_forward(x_nchw, p):
    """x_nchw: [N, Cin, H, W] f32.  Returns [N, Cout, Ho, Wo] f32 (PyTorch layout)."""
    stride = p["stride"]
    has_down = p.get("down_w") is not None
    x = jnp.transpose(x_nchw, (0, 2, 3, 1)).astype(jnp.float32)       # NCHW -> NHWC
    N, H, W, Cin = x.shape
    Cout = p["w1"].shape[-1]
    Ho = (H + 2 - 3) // stride + 1
    Wo = (W + 2 - 3) // stride + 1
    Mimg = Ho * Wo
    if not has_down:
        assert stride == 1 and Cin == Cout        # identity skip needs matching shapes

    # TODO(synk): the pad + even/odd phase split costs one extra XLA pass over x; it
    #             could be folded into the kernel with strided pl.ds reads.
    xp = jnp.pad(x, ((0, 0), (1, 1), (1, 1), (0, 0)))
    phases = (xp,) if stride == 1 else tuple(
        xp[:, a::2, b::2, :] for a in (0, 1) for b in (0, 1))

    # conv1 weight (+ fused downsample conv) as a [9*Cin, C1] bf16 matrix (im2col order).
    w1m = p["w1"].reshape(9 * Cin, Cout)
    g1, b1 = p["g1"], p["b1"]
    if has_down:
        w1m = jnp.concatenate([w1m, p["down_w"].reshape(9 * Cin, Cout)], axis=1)
        g1 = jnp.concatenate([g1, p["down_g"]])
        b1 = jnp.concatenate([b1, p["down_b"]])
    C1 = w1m.shape[1]
    w1m = w1m.astype(jnp.bfloat16)
    w2m = p["w2"].reshape(9 * Cout, Cout).astype(jnp.bfloat16)

    par = pltpu.CompilerParams(dimension_semantics=("parallel",))

    # ---- pass 1: conv1 (+ downsample) per image, BN1 partial statistics ------------
    k1 = _make_conv1_kernel(stride, Ho, Wo, Cin, C1)
    in_specs = [pl.BlockSpec((1,) + ph.shape[1:], lambda n: (n, 0, 0, 0)) for ph in phases]
    in_specs.append(pl.BlockSpec(w1m.shape, lambda n: (0, 0)))
    y1, st1 = pl.pallas_call(
        k1, grid=(N,),
        in_specs=in_specs,
        out_specs=(pl.BlockSpec((1, Mimg, C1), lambda n: (n, 0, 0)),
                   pl.BlockSpec((1, 2, C1), lambda n: (n, 0, 0))),
        out_shape=(jax.ShapeDtypeStruct((N, Mimg, C1), jnp.float32),
                   jax.ShapeDtypeStruct((N, 2, C1), jnp.float32)),
        compiler_params=par,
    )(*phases, w1m)

    scale1, shift1 = _bn_scale_shift(st1, g1, b1, float(N * Mimg))

    # ---- pass 2: BN1 + ReLU + conv2 per image, BN2 partial statistics --------------
    k2 = _make_conv2_kernel(Ho, Wo, Cout, C1, has_down)
    args = [y1, scale1[:Cout].reshape(1, Cout), shift1[:Cout].reshape(1, Cout), w2m]
    in_specs = [pl.BlockSpec((1, Mimg, C1), lambda n: (n, 0, 0)),
                pl.BlockSpec((1, Cout), lambda n: (0, 0)),
                pl.BlockSpec((1, Cout), lambda n: (0, 0)),
                pl.BlockSpec(w2m.shape, lambda n: (0, 0))]
    out_specs = [pl.BlockSpec((1, Mimg, Cout), lambda n: (n, 0, 0)),
                 pl.BlockSpec((1, 2, Cout), lambda n: (n, 0, 0))]
    out_shape = [jax.ShapeDtypeStruct((N, Mimg, Cout), jnp.float32),
                 jax.ShapeDtypeStruct((N, 2, Cout), jnp.float32)]
    if has_down:
        args += [scale1[Cout:].reshape(1, Cout), shift1[Cout:].reshape(1, Cout)]
        in_specs += [pl.BlockSpec((1, Cout), lambda n: (0, 0))] * 2
        out_specs.append(pl.BlockSpec((1, Mimg, Cout), lambda n: (n, 0, 0)))
        out_shape.append(jax.ShapeDtypeStruct((N, Mimg, Cout), jnp.float32))
    outs = pl.pallas_call(
        k2, grid=(N,),
        in_specs=in_specs,
        out_specs=tuple(out_specs),
        out_shape=tuple(out_shape),
        scratch_shapes=[pltpu.VMEM((1, Ho + 2, Wo + 2, Cout), jnp.float32)],
        compiler_params=par,
    )(*args)
    if has_down:
        y2, st2, res = outs
    else:
        (y2, st2), res = outs, x                  # identity skip connection

    scale2, shift2 = _bn_scale_shift(st2, p["g2"], p["b2"], float(N * Mimg))

    # ---- pass 3: BN2 + residual + ReLU, lane-dense [N, Ho, Wo*Cout] -----------------
    lane = Wo * Cout
    y2_l = y2.reshape(N, Ho, lane)                # free row-major reshapes (wrapper side)
    res_l = res.reshape(N, Ho, lane)
    sc2 = jnp.tile(scale2, Wo).reshape(1, 1, lane)
    sh2 = jnp.tile(shift2, Wo).reshape(1, 1, lane)
    out_l = pl.pallas_call(
        _epilogue_kernel, grid=(N,),
        in_specs=[pl.BlockSpec((1, Ho, lane), lambda n: (n, 0, 0)),
                  pl.BlockSpec((1, Ho, lane), lambda n: (n, 0, 0)),
                  pl.BlockSpec((1, 1, lane), lambda n: (0, 0, 0)),
                  pl.BlockSpec((1, 1, lane), lambda n: (0, 0, 0))],
        out_specs=pl.BlockSpec((1, Ho, lane), lambda n: (n, 0, 0)),
        out_shape=jax.ShapeDtypeStruct((N, Ho, lane), jnp.float32),
        compiler_params=par,
    )(y2_l, res_l, sc2, sh2)

    out = out_l.reshape(N, Ho, Wo, Cout)
    return jnp.transpose(out, (0, 3, 1, 2))       # NHWC -> NCHW


# ---------------------------------------------------------------------------
# Parameter init (deterministic, PyTorch-like: uniform convs, BN gamma=1 beta=0)
# ---------------------------------------------------------------------------
def _conv_w(key, cin, cout):
    bound = (1.0 / (9 * cin)) ** 0.5
    return jax.random.uniform(key, (3, 3, cin, cout), jnp.float32, -bound, bound)


def init_residual_block(key, in_ch, out_ch, stride=1, downsample=False):
    # TODO(synk): `downsample` is assumed to be the tutorial's conv3x3 + BatchNorm2d
    #             Sequential; an arbitrary user-supplied module is not representable.
    k1, k2, k3 = jax.random.split(key, 3)
    prm = {
        "stride": stride,
        "w1": _conv_w(k1, in_ch, out_ch),
        "g1": jnp.ones((out_ch,), jnp.float32), "b1": jnp.zeros((out_ch,), jnp.float32),
        "w2": _conv_w(k2, out_ch, out_ch),
        "g2": jnp.ones((out_ch,), jnp.float32), "b2": jnp.zeros((out_ch,), jnp.float32),
        "down_w": None,
    }
    if downsample:
        prm["down_w"] = _conv_w(k3, in_ch, out_ch)
        prm["down_g"] = jnp.ones((out_ch,), jnp.float32)
        prm["down_b"] = jnp.zeros((out_ch,), jnp.float32)
    return prm


if __name__ == "__main__":
    key = jax.random.PRNGKey(0)
    kx, kpa, kpb = jax.random.split(key, 3)
    x = jax.random.normal(kx, (2, 16, 16, 16), jnp.float32)       # NCHW, like PyTorch

    # Block A: the module's default config (identity skip, stride 1, in == out).
    blk_a = init_residual_block(kpa, 16, 16, stride=1, downsample=False)
    y_a = residual_block_forward(x, blk_a)

    # Block B: downsampling block as used in the tutorial ResNet (16 -> 32, stride 2).
    blk_b = init_residual_block(kpb, 16, 32, stride=2, downsample=True)
    y_b = residual_block_forward(x, blk_b)

    jax.block_until_ready((y_a, y_b))
    assert y_a.shape == (2, 16, 16, 16) and y_a.dtype == jnp.float32
    assert y_b.shape == (2, 32, 8, 8) and y_b.dtype == jnp.float32
    assert bool(jnp.isfinite(y_a).all()) and bool(jnp.isfinite(y_b).all())
    assert float(jnp.abs(y_a).max()) > 0.0 and float(jnp.abs(y_b).max()) > 0.0
    print("KERNEL_OK")
</pallas_src>

<mosaic_0001>
module attributes {stable_mosaic.version = 11 : i64} {
  func.func @kernel(%arg0: i32, %arg1: memref<1x18x18x16xf32, #tpu.memory_space<vmem>>, %arg2: memref<144x16xbf16, #tpu.memory_space<vmem>>, %arg3: memref<1x256x16xf32, #tpu.memory_space<vmem>>, %arg4: memref<1x2x16xf32, #tpu.memory_space<vmem>>) attributes {dimension_semantics = [#tpu.dimension_semantics<parallel>], iteration_bounds = array<i64: 2>, scalar_prefetch = 0 : i64, scratch_operands = 0 : i64, tpu.core_type = #tpu.core_type<tc>, window_params = [{transform_indices = @transform_0, window_bounds = array<i64: 1, 18, 18, 16>}, {pipeline_mode = #tpu.pipeline_mode<synchronous>, transform_indices = @transform_1, window_bounds = array<i64: 144, 16>}, {transform_indices = @transform_2, window_bounds = array<i64: 1, 256, 16>}, {transform_indices = @transform_3, window_bounds = array<i64: 1, 2, 16>}]} {
    %c0 = arith.constant 0 : index
    %c0_0 = arith.constant 0 : index
    %c0_1 = arith.constant 0 : index
    %c0_2 = arith.constant 0 : index
    %0 = vector.load %arg1[%c0, %c0_0, %c0_1, %c0_2] : memref<1x18x18x16xf32, #tpu.memory_space<vmem>>, vector<1x16x16x16xf32>
    %1 = vector.shape_cast %0 : vector<1x16x16x16xf32> to vector<256x16xf32>
    %2 = arith.truncf %1 : vector<256x16xf32> to vector<256x16xbf16>
    %c0_3 = arith.constant 0 : index
    %c0_4 = arith.constant 0 : index
    %c1 = arith.constant 1 : index
    %c0_5 = arith.constant 0 : index
    %3 = vector.load %arg1[%c0_3, %c0_4, %c1, %c0_5] : memref<1x18x18x16xf32, #tpu.memory_space<vmem>>, vector<1x16x16x16xf32>
    %4 = vector.shape_cast %3 : vector<1x16x16x16xf32> to vector<256x16xf32>
    %5 = arith.truncf %4 : vector<256x16xf32> to vector<256x16xbf16>
    %c0_6 = arith.constant 0 : index
    %c0_7 = arith.constant 0 : index
    %c2 = arith.constant 2 : index
    %c0_8 = arith.constant 0 : index
    %6 = vector.load %arg1[%c0_6, %c0_7, %c2, %c0_8] : memref<1x18x18x16xf32, #tpu.memory_space<vmem>>, vector<1x16x16x16xf32>
    %7 = vector.shape_cast %6 : vector<1x16x16x16xf32> to vector<256x16xf32>
    %8 = arith.truncf %7 : vector<256x16xf32> to vector<256x16xbf16>
    %c0_9 = arith.constant 0 : index
    %c1_10 = arith.constant 1 : index
    %c0_11 = arith.constant 0 : index
    %c0_12 = arith.constant 0 : index
    %9 = vector.load %arg1[%c0_9, %c1_10, %c0_11, %c0_12] : memref<1x18x18x16xf32, #tpu.memory_space<vmem>>, vector<1x16x16x16xf32>
    %10 = vector.shape_cast %9 : vector<1x16x16x16xf32> to vector<256x16xf32>
    %11 = arith.truncf %10 : vector<256x16xf32> to vector<256x16xbf16>
    %c0_13 = arith.constant 0 : index
    %c1_14 = arith.constant 1 : index
    %c1_15 = arith.constant 1 : index
    %c0_16 = arith.constant 0 : index
    %12 = vector.load %arg1[%c0_13, %c1_14, %c1_15, %c0_16] : memref<1x18x18x16xf32, #tpu.memory_space<vmem>>, vector<1x16x16x16xf32>
    %13 = vector.shape_cast %12 : vector<1x16x16x16xf32> to vector<256x16xf32>
    %14 = arith.truncf %13 : vector<256x16xf32> to vector<256x16xbf16>
    %c0_17 = arith.constant 0 : index
    %c1_18 = arith.constant 1 : index
    %c2_19 = arith.constant 2 : index
    %c0_20 = arith.constant 0 : index
    %15 = vector.load %arg1[%c0_17, %c1_18, %c2_19, %c0_20] : memref<1x18x18x16xf32, #tpu.memory_space<vmem>>, vector<1x16x16x16xf32>
    %16 = vector.shape_cast %15 : vector<1x16x16x16xf32> to vector<256x16xf32>
    %17 = arith.truncf %16 : vector<256x16xf32> to vector<256x16xbf16>
    %c0_21 = arith.constant 0 : index
    %c2_22 = arith.constant 2 : index
    %c0_23 = arith.constant 0 : index
    %c0_24 = arith.constant 0 : index
    %18 = vector.load %arg1[%c0_21, %c2_22, %c0_23, %c0_24] : memref<1x18x18x16xf32, #tpu.memory_space<vmem>>, vector<1x16x16x16xf32>
    %19 = vector.shape_cast %18 : vector<1x16x16x16xf32> to vector<256x16xf32>
    %20 = arith.truncf %19 : vector<256x16xf32> to vector<256x16xbf16>
    %c0_25 = arith.constant 0 : index
    %c2_26 = arith.constant 2 : index
    %c1_27 = arith.constant 1 : index
    %c0_28 = arith.constant 0 : index
    %21 = vector.load %arg1[%c0_25, %c2_26, %c1_27, %c0_28] : memref<1x18x18x16xf32, #tpu.memory_space<vmem>>, vector<1x16x16x16xf32>
    %22 = vector.shape_cast %21 : vector<1x16x16x16xf32> to vector<256x16xf32>
    %23 = arith.truncf %22 : vector<256x16xf32> to vector<256x16xbf16>
    %c0_29 = arith.constant 0 : index
    %c2_30 = arith.constant 2 : index
    %c2_31 = arith.constant 2 : index
    %c0_32 = arith.constant 0 : index
    %24 = vector.load %arg1[%c0_29, %c2_30, %c2_31, %c0_32] : memref<1x18x18x16xf32, #tpu.memory_space<vmem>>, vector<1x16x16x16xf32>
    %25 = vector.shape_cast %24 : vector<1x16x16x16xf32> to vector<256x16xf32>
    %26 = arith.truncf %25 : vector<256x16xf32> to vector<256x16xbf16>
    %27 = tpu.concatenate %2, %5, %8, %11, %14, %17, %20, %23, %26 in 1 : vector<256x16xbf16>, vector<256x16xbf16>, vector<256x16xbf16>, vector<256x16xbf16>, vector<256x16xbf16>, vector<256x16xbf16>, vector<256x16xbf16>, vector<256x16xbf16>, vector<256x16xbf16> -> vector<256x144xbf16>
    %c0_33 = arith.constant 0 : index
    %c0_34 = arith.constant 0 : index
    %28 = vector.load %arg2[%c0_33, %c0_34] : memref<144x16xbf16, #tpu.memory_space<vmem>>, vector<144x16xbf16>
    %cst = arith.constant dense<0.000000e+00> : vector<256x16xf32>
    %29 = tpu.matmul %27, %28, %cst {dimension_numbers = #tpu.dot_dimension_numbers<[1], [0], [0], [1], [0, 0, 1, 1], [], []>} : vector<256x144xbf16>, vector<144x16xbf16>, vector<256x16xf32> -> vector<256x16xf32>
    %30 = vector.shape_cast %29 : vector<256x16xf32> to vector<1x256x16xf32>
    %c0_35 = arith.constant 0 : index
    %c0_36 = arith.constant 0 : index
    %c0_37 = arith.constant 0 : index
    %31 = vector.load %arg3[%c0_35, %c0_36, %c0_37] : memref<1x256x16xf32, #tpu.memory_space<vmem>>, vector<1x256x16xf32>
    tpu.vector_store %arg3[%c0_35, %c0_36, %c0_37], %30 {strides = array<i32>} : memref<1x256x16xf32, #tpu.memory_space<vmem>>, vector<1x256x16xf32>,
    %cst_38 = arith.constant dense<0.000000e+00> : vector<16xf32>
    %32 = vector.multi_reduction <add>, %29, %cst_38 [0] : vector<256x16xf32> to vector<16xf32>
    %33 = vector.shape_cast %32 : vector<16xf32> to vector<1x16xf32>
    %34 = arith.mulf %29, %29 : vector<256x16xf32>
    %cst_39 = arith.constant dense<0.000000e+00> : vector<16xf32>
    %35 = vector.multi_reduction <add>, %34, %cst_39 [0] : vector<256x16xf32> to vector<16xf32>
    %36 = vector.shape_cast %35 : vector<16xf32> to vector<1x16xf32>
    %37 = tpu.concatenate %33, %36 in 0 : vector<1x16xf32>, vector<1x16xf32> -> vector<2x16xf32>
    %38 = vector.shape_cast %37 : vector<2x16xf32> to vector<1x2x16xf32>
    %c0_40 = arith.constant 0 : index
    %c0_41 = arith.constant 0 : index
    %c0_42 = arith.constant 0 : index
    %39 = vector.load %arg4[%c0_40, %c0_41, %c0_42] : memref<1x2x16xf32, #tpu.memory_space<vmem>>, vector<1x2x16xf32>
    tpu.vector_store %arg4[%c0_40, %c0_41, %c0_42], %38 {strides = array<i32>} : memref<1x2x16xf32, #tpu.memory_space<vmem>>, vector<1x2x16xf32>,
    return
  }
  func.func @transform_0(%arg0: i32) -> (i32, i32, i32, i32) {
    %c0_i32 = arith.constant 0 : i32
    %c0_i32_0 = arith.constant 0 : i32
    %c0_i32_1 = arith.constant 0 : i32
    %c0_i32_2 = arith.constant 0 : i32
    return %arg0, %c0_i32, %c0_i32_0, %c0_i32_1 : i32, i32, i32, i32
  }
  func.func @transform_1(%arg0: i32) -> (i32, i32) {
    %c0_i32 = arith.constant 0 : i32
    %c0_i32_0 = arith.constant 0 : i32
    %c0_i32_1 = arith.constant 0 : i32
    return %c0_i32, %c0_i32_0 : i32, i32
  }
  func.func @transform_2(%arg0: i32) -> (i32, i32, i32) {
    %c0_i32 = arith.constant 0 : i32
    %c0_i32_0 = arith.constant 0 : i32
    %c0_i32_1 = arith.constant 0 : i32
    return %arg0, %c0_i32, %c0_i32_0 : i32, i32, i32
  }
  func.func @transform_3(%arg0: i32) -> (i32, i32, i32) {
    %c0_i32 = arith.constant 0 : i32
    %c0_i32_0 = arith.constant 0 : i32
    %c0_i32_1 = arith.constant 0 : i32
    return %arg0, %c0_i32, %c0_i32_0 : i32, i32, i32
  }
}

</mosaic_0001>

<bundles_post_ra>
// kernel: tpu_custom_call.1
= control target key start
LH: loop header
LB: loop body
LE: loop exit
PB: predicated region body
PF: predicated region fallthrough
CT: control target
= control target key end

     0   :  { %9 = vsyncpa [#allocation3], 0  ;;  %s3026_s0 = inlined_call_operand.vmem [shape: f32[2,18,18,16], index: 0, kind: input, shape index: {}]   ;;  %s3027_s1 = inlined_call_operand.vmem [shape: bf16[144,16], index: 1, kind: input, shape index: {}]   ;;  %s3028_s2 = inlined_call_operand.vmem [shape: f32[2,256,16], index: 2, kind: output, shape index: {0}]   ;;  %s3029_s3 = inlined_call_operand.hbm [shape: f32[2,2,16], index: 3, kind: output, shape index: {1}]  }
   0x1   :  { %11 = vsyncpa [#allocation3 + $0x1], 0  ;;  %s2205_s12 = smov 0   ;;  %s2207_s13 = smov 0  }
   0x2   :  { %s2209_s14 = smov 0   ;;  %s2211_s15 = smov 0  }
   0x3 LB: > { %s2226_s16 = sadd.s32 4294967295, %s2174_s15   ;;  %s1809_s17 = sadd.s32 4294967294, %s2174_s15   ;;  %s2174_s15 = sphi %s2211_s15, %s3035_s15   ;;  %s2170_s14 = sphi %s2209_s14, %s3034_s14   ;;  %s2166_s13 = sphi %s2207_s13, %s3033_s13   ;;  %s2162_s12 = sphi %s2205_s12, %s3032_s12  }
   0x4   : > { %s2230_s18 = sadd.s32 1, %s2174_s15   ;;  %s97_s19 = sadd.s32 1, %s2170_s14 }
   0x5   : > { %s94_s20 = ssub.s32 %s2174_s15, %s2230_s18  ;;  %p107_p0 = scmp.ne.s32.totalorder %s2170_s14, %s2166_s13 }
   0x6   : > { %p95_p1 = scmp.eq.s32.totalorder %s94_s20, 0  ;;  %p108_p2 = scmp.eq.s32.totalorder %s2226_s16, 1 }
   0x7   : > { %p113_p3 = scmp.ne.s32.totalorder %s2166_s13, %s2162_s12  ;;  %p114_p4 = scmp.eq.s32.totalorder %s1809_s17, 1 }
   0x8   : > { %s2241_s21 = scalar_select %p95_p1, %s2170_s14, %s97_s19  }
   0x9   : > { %p2243_p5 = por %p108_p2, %p107_p0  ;;  %p2247_p6 = por %p114_p4, %p113_p3 }
   0xa   : > { %p1812_p7 = scmp.ge.s32.totalorder %s2174_s15, 1  ;;  %p143_p8 = scmp.lt.s32.totalorder %s2174_s15, 3 }
   0xc   : > { %p144_p9 = pnand %p1812_p7, %p143_p8 }
   0xd   : > { %p172_p10 = scmp.lt.s32.totalorder (!%p144_p9), %s2226_s16, 1  ;;  %s2177_s8 = smov (!%p144_p9), 48  }
   0xe   : > { %147 = sbr.rel (%p144_p9) target bundleno = 593 (0x251), region = 28  ;;  %s2178_s11 = smov (!%p144_p9), 16  }
   0xf   : > { %s2179_s17 = smov (!%p144_p9), 64   ;;  %s2180_s24 = smov (!%p144_p9), 32  }
  0x10   : > { %s2181_s25 = smov (!%p144_p9), 96   ;;  %s2183_s30 = smov (!%p144_p9), 112  }
  0x13   : > { %v2105_v0 = vld [vmem:[%s3027_s1 + $0x38] sm:$0xff]   ;;  %v2176_v1 = vmov 0   ;;  %s2260_s26 = scalar_select %p172_p10, %s2226_s16, 1  ;;  %v2106_v2 = vld [vmem:[%s3027_s1 + $0x30] sm:$0xff]   ;;  %v2107_v3 = vld [vmem:[%s3027_s1 + $0x28] sm:$0xff]   ;;  %vm953_vm0 = vcmask 130048  }
  0x14   : > { %1336 = vmatprep.subr.bf16.mxu0 %v2176_v1  ;;  %2039 = vmatprep.subr.bf16.mxu1 %v2176_v1  ;;  %v2108_v15 = vld [vmem:[%s3027_s1 + $0x20] sm:$0xff]   ;;  %v2109_v25 = vld [vmem:[%s3027_s1 + $0x18] sm:$0xff]   ;;  %v2110_v29 = vld [vmem:[%s3027_s1 + $0x10] sm:$0xff]   ;;  %vm1002_vm1 = vcmask 261120   ;;  %vm1035_vm2 = vcmask 392192   ;;  %vm1068_vm3 = vcmask 523264  }
  0x15   : > { %1337 = vmatpush1.bf16.msra.mxu0 %v2105_v0  ;;  %2048 = vmatpush1.bf16.msra.mxu1 %v2105_v0  ;;  %s2057_s29 = smul.u32 432, %s2260_s26  ;;  %v2111_v38 = vld [vmem:[%s3027_s1 + $0x8] sm:$0xff]   ;;  %v2112_v41 = vld [vmem:[%s3027_s1] sm:$0xff]   ;;  %vm1101_vm4 = vcmask 654336   ;;  %vm1134_vm5 = vcmask 785408   ;;  %vm1167_vm6 = vcmask 916480  }
  0x16   : > { %1338 = vmatprep.subr.bf16.mxu0 %v2176_v1  ;;  %2040 = vmatprep.subr.bf16.mxu1 %v2176_v1  ;;  %v2113_v42 = vld [vmem:[%s3027_s1 + $0x40] sm:$0xff]   ;;  %vm1699_vm7 = vcmask 1040384   ;;  %vm1701_vm8 = vcmask 123904  }
  0x17   : > { %s2271_s5 = scalar_lea.vmem %s3026_s0, %s2057_s29  ;;  %s2182_s29 = smov 80  }
  0x18   : > { %v1817_v4 = vld [vmem:[%s2271_s5 + $0x18] sm:$0xff]  ;;  %v1818_v5 = vld [vmem:[%s2271_s5 + $0x20] sm:$0xff]  ;;  %v232_v8 = vld [vmem:[%s2271_s5 + $0x9] sm:$0xff] }
  0x19   : > { %1339 = vmatpush1.bf16.msra.mxu0 %v2106_v2  ;;  %2049 = vmatpush1.bf16.msra.mxu1 %v2106_v2  ;;  %v231_v6 = vld [vmem:[%s2271_s5 + $0x1] sm:$0xff]  ;;  %v2281_v7 = vpack.c.bf16 %v1818_v5, %v1817_v4  ;;  %v1849_v9 = vld [vmem:[%s2271_s5 + $0x19] sm:$0xff]  ;;  %v280_v13 = vld [vmem:[%s2271_s5 + $0xa] sm:$0xff] }
  0x1a   : > { %1340 = vmatprep.subr.bf16.mxu0 %v2176_v1  ;;  %2041 = vmatprep.subr.bf16.mxu1 %v2176_v1  ;;  %v1850_v10 = vld [vmem:[%s2271_s5 + $0x21] sm:$0xff]  ;;  %v263_v11 = vpack.c.bf16 %v232_v8, %v231_v6  ;;  %v1913_v17 = vld [vmem:[%s2271_s5 + $0x30] sm:$0xff]  ;;  %v1914_v18 = vld [vmem:[%s2271_s5 + $0x38] sm:$0xff] }
  0x1b   : > { %v279_v12 = vld [vmem:[%s2271_s5 + $0x2] sm:$0xff]  ;;  %729 = vrot.lane.b32.xlu1 %v2281_v7, %s2177_s8  ;;  %v408_v14 = vpack.c.bf16 %v1850_v10, %v1849_v9  ;;  %v1883_v19 = vld [vmem:[%s2271_s5 + $0x32] sm:$0xff]  ;;  %v1881_v20 = vld [vmem:[%s2271_s5 + $0x1a] sm:$0xff]  ;;  %v2303_v23 = vpack.c.bf16 %v1914_v18, %v1913_v17 }
  0x1c   : > { %633 = vrot.lane.b32.xlu0 %v263_v11, %s2178_s11  ;;  %v311_v16 = vpack.c.bf16 %v280_v13, %v279_v12  ;;  %v1882_v21 = vld [vmem:[%s2271_s5 + $0x22] sm:$0xff]  ;;  %v1884_v22 = vld [vmem:[%s2271_s5 + $0x3a] sm:$0xff]  ;;  %v1945_v27 = vld [vmem:[%s2271_s5 + $0x31] sm:$0xff] }
  0x1d   : > { %1341 = vmatpush1.bf16.msra.mxu0 %v2107_v3  ;;  %2050 = vmatpush1.bf16.msra.mxu1 %v2107_v3  ;;  %v457_v24 = vpack.c.bf16 %v1884_v22, %v1883_v19  ;;  %v456_v26 = vpack.c.bf16 %v1882_v21, %v1881_v20  ;;  %v1946_v28 = vld [vmem:[%s2271_s5 + $0x39] sm:$0xff]  ;;  %v1947_v34 = vld [vmem:[%s2271_s5 + $0x49] sm:$0xff]  ;;  %v1948_v35 = vld [vmem:[%s2271_s5 + $0x51] sm:$0xff] }
  0x1e   : > { %1342 = vmatprep.subr.bf16.mxu0 %v2176_v1  ;;  %2042 = vmatprep.subr.bf16.mxu1 %v2176_v1  ;;  %v553_v30 = vpack.c.bf16 %v1946_v28, %v1945_v27  ;;  %v1899_v31 = vld [vmem:[%s2271_s5 + $0xf2] sm:$0xff]  ;;  %v1900_v32 = vld [vmem:[%s2271_s5 + $0xfa] sm:$0xff]  ;;  %v1915_v36 = vld [vmem:[%s2271_s5 + $0x48] sm:$0xff]  ;;  %v554_v39 = vpack.c.bf16 %v1948_v35, %v1947_v34 }
  0x1f   : > { %777 = vrot.lane.b32.xlu1 %v408_v14, %s2179_s17  ;;  %2018 = vmatprep.mubr.msk.bf16.mxu0 %vm953_vm0, %v457_v24  ;;  %v2327_v33 = vpack.c.bf16 %v1900_v32, %v1899_v31  ;;  %v1916_v37 = vld [vmem:[%s2271_s5 + $0x50] sm:$0xff]  ;;  %v1917_v43 = vld [vmem:[%s2271_s5 + $0x60] sm:$0xff]  ;;  %v1918_v44 = vld [vmem:[%s2271_s5 + $0x68] sm:$0xff] }
  0x20   : > { %681 = vrot.lane.b32.xlu0 %v311_v16, %s2180_s24  ;;  %v2344_v40 = vpack.c.bf16 %v1916_v37, %v1915_v36  ;;  %v1885_v45 = vld [vmem:[%s2271_s5 + $0x4a] sm:$0xff]  ;;  %v1886_v46 = vld [vmem:[%s2271_s5 + $0x52] sm:$0xff]  ;;  %v2366_v47 = vpack.c.bf16 %v1918_v44, %v1917_v43  ;;  %v1949_v49 = vld [vmem:[%s2271_s5 + $0x61] sm:$0xff] }
  0x21   : > { %1343 = vmatpush1.bf16.msra.mxu0 %v2108_v15  ;;  %2051 = vmatpush1.bf16.msra.mxu1 %v2108_v15  ;;  %v2370_v48 = vpack.c.bf16 %v1886_v46, %v1885_v45  ;;  %v1950_v50 = vld [vmem:[%s2271_s5 + $0x69] sm:$0xff]  ;;  %v1951_v55 = vld [vmem:[%s2271_s5 + $0x79] sm:$0xff]  ;;  %v1952_v56 = vld [vmem:[%s2271_s5 + $0x81] sm:$0xff] }
  0x22   : > { %1344 = vmatprep.subr.bf16.mxu0 %v2176_v1  ;;  %2043 = vmatprep.subr.bf16.mxu1 %v2176_v1  ;;  %v555_v51 = vpack.c.bf16 %v1950_v50, %v1949_v49  ;;  %v1887_v52 = vld [vmem:[%s2271_s5 + $0x62] sm:$0xff]  ;;  %v1888_v53 = vld [vmem:[%s2271_s5 + $0x6a] sm:$0xff]  ;;  %v1919_v57 = vld [vmem:[%s2271_s5 + $0x78] sm:$0xff]  ;;  %v556_v59 = vpack.c.bf16 %v1952_v56, %v1951_v55 }
  0x23   : > { %873 = vrot.lane.b32.xlu1 %v2303_v23, %s2181_s25  ;;  %2026 = vmatprep.mubr.msk.bf16.mxu1 %vm953_vm0, %v2327_v33  ;;  %v2384_v54 = vpack.c.bf16 %v1888_v53, %v1887_v52  ;;  %v1920_v58 = vld [vmem:[%s2271_s5 + $0x80] sm:$0xff]  ;;  %v248_v62 = vld [vmem:[%s2271_s5 + $0xc9] sm:$0xff]  ;;  %v1833_v3 = vld [vmem:[%s2271_s5 + $0xd8] sm:$0xff] }
  0x24   : > { %825 = vrot.lane.b32.xlu0 %v456_v26, %s2182_s29  ;;  %v2395_v60 = vpack.c.bf16 %v1920_v58, %v1919_v57  ;;  %v247_v61 = vld [vmem:[%s2271_s5 + $0xc1] sm:$0xff]  ;;  %v1865_v6 = vld [vmem:[%s2271_s5 + $0xd9] sm:$0xff]  ;;  %v1929_v16 = vld [vmem:[%s2271_s5 + $0xf0] sm:$0xff] }
  0x25   : > { %1345 = vmatpush1.bf16.msra.mxu0 %v2109_v25  ;;  %2052 = vmatpush1.bf16.msra.mxu1 %v2109_v25  ;;  %v2400_v63 = vpack.c.bf16 %v248_v62, %v247_v61  ;;  %v295_v0 = vld [vmem:[%s2271_s5 + $0xc2] sm:$0xff]  ;;  %v1897_v10 = vld [vmem:[%s2271_s5 + $0xda] sm:$0xff]  ;;  %v1921_v18 = vld [vmem:[%s2271_s5 + $0x90] sm:$0xff] }
  0x26   : > { %1346 = vmatprep.subr.bf16.mxu0 %v2176_v1  ;;  %2044 = vmatprep.subr.bf16.mxu1 %v2176_v1  ;;  %v1834_v4 = vld [vmem:[%s2271_s5 + $0xe0] sm:$0xff]  ;;  %v1930_v17 = vld [vmem:[%s2271_s5 + $0xf8] sm:$0xff]  ;;  %v1931_v32 = vld [vmem:[%s2271_s5 + $0x108] sm:$0xff] }
  0x27   : > { %635 = vrot.lane.b32.xlu1 %v408_v14, %s2178_s11  ;;  %v2415_v5 = vpack.c.bf16 %v1834_v4, %v1833_v3  ;;  %v1866_v8 = vld [vmem:[%s2271_s5 + $0xe1] sm:$0xff]  ;;  %v1922_v19 = vld [vmem:[%s2271_s5 + $0x98] sm:$0xff]  ;;  %v513_v20 = vpack.c.bf16 %v1930_v17, %v1929_v16  ;;  %v1932_v34 = vld [vmem:[%s2271_s5 + $0x110] sm:$0xff] }
  0x28   : > { %921 = vrot.lane.b32.xlu0 %v553_v30, %s2183_s30  ;;  %v2423_v9 = vpack.c.bf16 %v1866_v8, %v1865_v6  ;;  %v1898_v11 = vld [vmem:[%s2271_s5 + $0xe2] sm:$0xff]  ;;  %v1889_v12 = vld [vmem:[%s2271_s5 + $0x7a] sm:$0xff]  ;;  %v509_v21 = vpack.c.bf16 %v1922_v19, %v1921_v18  ;;  %v1961_v22 = vld [vmem:[%s2271_s5 + $0xf1] sm:$0xff]  ;;  %v514_v37 = vpack.c.bf16 %v1932_v34, %v1931_v32 }
  0x29   : > { %1347 = vmatpush1.bf16.msra.mxu0 %v2110_v29  ;;  %2053 = vmatpush1.bf16.msra.mxu1 %v2110_v29  ;;  %v1890_v13 = vld [vmem:[%s2271_s5 + $0x82] sm:$0xff]  ;;  %v464_v14 = vpack.c.bf16 %v1898_v11, %v1897_v10  ;;  %v1953_v25 = vld [vmem:[%s2271_s5 + $0x91] sm:$0xff] }
  0x2a   : > { %1348 = vmatprep.subr.bf16.mxu0 %v2176_v1  ;;  %2045 = vmatprep.subr.bf16.mxu1 %v2176_v1  ;;  %v2434_v15 = vpack.c.bf16 %v1890_v13, %v1889_v12  ;;  %v1891_v29 = vld [vmem:[%s2271_s5 + $0x92] sm:$0xff]  ;;  %v1923_v35 = vld [vmem:[%s2271_s5 + $0xa8] sm:$0xff]  ;;  %v183_v46 = vld [vmem:[%s2271_s5] sm:$0xff] }
  0x2b   : > { %731 = vrot.lane.b32.xlu1 %v2303_v23, %s2177_s8  ;;  %v1924_v36 = vld [vmem:[%s2271_s5 + $0xb0] sm:$0xff]  ;;  %v184_v49 = vld [vmem:[%s2271_s5 + $0x8] sm:$0xff]  ;;  %v1933_v10 = vld [vmem:[%s2271_s5 + $0x120] sm:$0xff] }
  0x2c   : > { %683 = vrot.lane.b32.xlu0 %v456_v26, %s2180_s24  ;;  %v1954_v26 = vld [vmem:[%s2271_s5 + $0x99] sm:$0xff]  ;;  %v1956_v43 = vld [vmem:[%s2271_s5 + $0xb1] sm:$0xff]  ;;  %v215_v52 = vpack.c.bf16 %v184_v49, %v183_v46  ;;  %v1934_v11 = vld [vmem:[%s2271_s5 + $0x128] sm:$0xff] }
  0x2d   : > { %1349 = vmatpush1.bf16.msra.mxu0 %v2111_v38  ;;  %2054 = vmatpush1.bf16.msra.mxu1 %v2111_v38  ;;  %v557_v28 = vpack.c.bf16 %v1954_v26, %v1953_v25  ;;  %v510_v38 = vpack.c.bf16 %v1924_v36, %v1923_v35  ;;  %v1925_v13 = vld [vmem:[%s2271_s5 + $0xc0] sm:$0xff]  ;;  %v2522_v19 = vpack.c.bf16 %v1934_v11, %v1933_v10 }
  0x2e   : > { %1350 = vmatprep.subr.bf16.mxu0 %v2176_v1  ;;  %2046 = vmatprep.subr.bf16.mxu1 %v2176_v1 }
  0x2f   : > { %827 = vrot.lane.b32.xlu1 %v457_v24, %s2182_s29 }
  0x30   : > { %779 = vrot.lane.b32.xlu0 %v553_v30, %s2179_s17 }
  0x31   : > { %1351 = vmatpush1.bf16.msra.mxu0 %v2112_v41  ;;  %2055 = vmatpush1.bf16.msra.mxu1 %v2112_v41  ;;  %v1964_v41 = vld [vmem:[%s2271_s5 + $0x111] sm:$0xff] }
  0x32   : > { %1366 = vmatprep.subr.bf16.mxu0 %v2176_v1  ;;  %2047 = vmatprep.subr.bf16.mxu1 %v2176_v1  ;;  %v296_v1 = vld [vmem:[%s2271_s5 + $0xca] sm:$0xff] }
  0x33   : > { %923 = vrot.lane.b32.xlu1 %v554_v39, %s2183_s30  ;;  %v2408_v2 = vpack.c.bf16 %v296_v1, %v295_v0  ;;  %v1893_v0 = vld [vmem:[%s2271_s5 + $0xaa] sm:$0xff]  ;;  %v1894_v1 = vld [vmem:[%s2271_s5 + $0xb2] sm:$0xff] }
  0x34   : > { %875 = vrot.lane.b32.xlu0 %v2344_v40, %s2181_s25  ;;  %v2512_v8 = vpack.c.bf16 %v1894_v1, %v1893_v0 }
  0x35   : > { %1367 = vmatpush2.bf16.msra.mxu0 %v2113_v42  ;;  %2056 = vmatpush2.bf16.msra.mxu1 %v2113_v42  ;;  %v1955_v42 = vld [vmem:[%s2271_s5 + $0xa9] sm:$0xff] }
  0x36   : > { %v2481_v45 = vpack.c.bf16 %v1956_v43, %v1955_v42 }
  0x37   : > { %685 = vrot.lane.b32.xlu1 %v457_v24, %s2180_s24  ;;  %v1962_v24 = vld [vmem:[%s2271_s5 + $0xf9] sm:$0xff] }
  0x38   : > { %637 = vrot.lane.b32.xlu0 %v553_v30, %s2178_s11  ;;  %v561_v27 = vpack.c.bf16 %v1962_v24, %v1961_v22  ;;  %v1892_v30 = vld [vmem:[%s2271_s5 + $0x9a] sm:$0xff]  ;;  %v1966_v22 = vld [vmem:[%s2271_s5 + $0x129] sm:$0xff] }
  0x39   : > { %v2463_v31 = vpack.c.bf16 %v1892_v30, %v1891_v29 }
  0x3b   : > { %781 = vrot.lane.b32.xlu1 %v554_v39, %s2179_s17 }
  0x3c   : > { %733 = vrot.lane.b32.xlu0 %v2344_v40, %s2177_s8 }
  0x3f   : > { %877 = vrot.lane.b32.xlu1 %v2366_v47, %s2181_s25 }
  0x40   : > { %829 = vrot.lane.b32.xlu0 %v2370_v48, %s2182_s29 }
  0x43   : > { %639 = vrot.lane.b32.xlu1 %v554_v39, %s2178_s11  ;;  %v1963_v39 = vld [vmem:[%s2271_s5 + $0x109] sm:$0xff] }
  0x44   : > { %925 = vrot.lane.b32.xlu0 %v555_v51, %s2183_s30  ;;  %v2478_v44 = vpack.c.bf16 %v1964_v41, %v1963_v39 }
  0x47   : > { %735 = vrot.lane.b32.xlu1 %v2366_v47, %s2177_s8 }
  0x48   : > { %687 = vrot.lane.b32.xlu0 %v2370_v48, %s2180_s24 }
  0x4b   : > { %831 = vrot.lane.b32.xlu1 %v2384_v54, %s2182_s29 }
  0x4c   : > { %783 = vrot.lane.b32.xlu0 %v555_v51, %s2179_s17 }
  0x4f   : > { %927 = vrot.lane.b32.xlu1 %v556_v59, %s2183_s30 }
  0x50   : > { %879 = vrot.lane.b32.xlu0 %v2395_v60, %s2181_s25 }
  0x53   : > { %649 = vrot.lane.b32.xlu1 %v2400_v63, %s2178_s11 }
  0x54   : > { %641 = vrot.lane.b32.xlu0 %v555_v51, %s2178_s11 }
  0x57   : > { %697 = vrot.lane.b32.xlu1 %v2408_v2, %s2180_s24 }
  0x58   : > { %689 = vrot.lane.b32.xlu0 %v2384_v54, %s2180_s24 }
  0x5b   : > { %745 = vrot.lane.b32.xlu1 %v2415_v5, %s2177_s8 }
  0x5c   : > { %737 = vrot.lane.b32.xlu0 %v2395_v60, %s2177_s8 }
  0x5f   : > { %793 = vrot.lane.b32.xlu1 %v2423_v9, %s2179_s17 }
  0x60   : > { %785 = vrot.lane.b32.xlu0 %v556_v59, %s2179_s17 }
  0x63   : > { %841 = vrot.lane.b32.xlu1 %v464_v14, %s2182_s29 }
  0x64   : > { %833 = vrot.lane.b32.xlu0 %v2434_v15, %s2182_s29 }
  0x67   : > { %889 = vrot.lane.b32.xlu1 %v513_v20, %s2181_s25 }
  0x68   : > { %881 = vrot.lane.b32.xlu0 %v509_v21, %s2181_s25 }
  0x6b   : > { %937 = vrot.lane.b32.xlu1 %v561_v27, %s2183_s30 }
  0x6c   : > { %929 = vrot.lane.b32.xlu0 %v557_v28, %s2183_s30 }
  0x6f   : > { %651 = vrot.lane.b32.xlu1 %v2423_v9, %s2178_s11 }
  0x70   : > { %643 = vrot.lane.b32.xlu0 %v556_v59, %s2178_s11  ;;  %v1902_v59 = vld [vmem:[%s2271_s5 + $0x112] sm:$0xff] }
  0x73   : > { %699 = vrot.lane.b32.xlu1 %v464_v14, %s2180_s24  ;;  %v1926_v14 = vld [vmem:[%s2271_s5 + $0xc8] sm:$0xff] }
  0x74   : > { %691 = vrot.lane.b32.xlu0 %v2434_v15, %s2180_s24 }
  0x77   : > { %747 = vrot.lane.b32.xlu1 %v513_v20, %s2177_s8  ;;  %v2526_v20 = vpack.c.bf16 %v1926_v14, %v1925_v13 }
  0x78   : > { %739 = vrot.lane.b32.xlu0 %v509_v21, %s2177_s8  ;;  %v1965_v21 = vld [vmem:[%s2271_s5 + $0x121] sm:$0xff] }
  0x7b   : > { %795 = vrot.lane.b32.xlu1 %v561_v27, %s2179_s17 }
  0x7c   : > { %787 = vrot.lane.b32.xlu0 %v557_v28, %s2179_s17 }
  0x7f   : > { %843 = vrot.lane.b32.xlu1 %v2327_v33, %s2182_s29 }
  0x80   : > { %835 = vrot.lane.b32.xlu0 %v2463_v31, %s2182_s29 }
  0x83   : > { %891 = vrot.lane.b32.xlu1 %v514_v37, %s2181_s25 }
  0x84   : > { %883 = vrot.lane.b32.xlu0 %v510_v38, %s2181_s25 }
  0x87   : > { %939 = vrot.lane.b32.xlu1 %v2478_v44, %s2183_s30 }
  0x88   : > { %931 = vrot.lane.b32.xlu0 %v2481_v45, %s2183_s30 }
  0x8b   : > { %653 = vrot.lane.b32.xlu1 %v561_v27, %s2178_s11 }
  0x8c   : > { %645 = vrot.lane.b32.xlu0 %v557_v28, %s2178_s11  ;;  %v2537_v28 = vpack.c.bf16 %v1966_v22, %v1965_v21  ;;  %v1905_v21 = vld [vmem:[%s2271_s5 + $0x13a] sm:$0xff]  ;;  %v1906_v22 = vld [vmem:[%s2271_s5 + $0x142] sm:$0xff] }
  0x8d   : > { %v730_v50 = vpop.permute.xlu1 %729 }
  0x8e   : > { %v634_v51 = vpop.permute.xlu0 %633 }
  0x8f   : > { %701 = vrot.lane.b32.xlu1 %v2327_v33, %s2180_s24  ;;  %v956_v55 = vsel %vm953_vm0, %v215_v52, %v634_v51  ;;  %v1901_v33 = vld [vmem:[%s2271_s5 + $0x10a] sm:$0xff] }
  0x90   : > { %693 = vrot.lane.b32.xlu0 %v2463_v31, %s2180_s24  ;;  %v2508_v6 = vpack.c.bf16 %v1902_v59, %v1901_v33 }
  0x91   : > { %v778_v53 = vpop.permute.xlu1 %777 }
  0x92   : > { %v682_v56 = vpop.permute.xlu0 %681 }
  0x93   : > { %v1004_v57 = vsel %vm1002_vm1, %v956_v55, %v682_v56  ;;  %749 = vrot.lane.b32.xlu1 %v514_v37, %s2177_s8  ;;  %v1936_v55 = vld [vmem:[%s2271_s5 + $0x140] sm:$0xff] }
  0x94   : > { %v1037_v58 = vsel %vm1035_vm2, %v1004_v57, %v730_v50  ;;  %741 = vrot.lane.b32.xlu0 %v510_v38, %s2177_s8 }
  0x95   : > { %v874_v61 = vpop.permute.xlu1 %873  ;;  %v1070_v62 = vsel %vm1068_vm3, %v1037_v58, %v778_v53  ;;  %v1935_v53 = vld [vmem:[%s2271_s5 + $0x138] sm:$0xff] }
  0x96   : > { %v826_v3 = vpop.permute.xlu0 %825  ;;  %v2584_v59 = vpack.c.bf16 %v1936_v55, %v1935_v53 }
  0x97   : > { %v1103_v4 = vsel %vm1101_vm4, %v1070_v62, %v826_v3  ;;  %797 = vrot.lane.b32.xlu1 %v2478_v44, %s2179_s17  ;;  %v1968_v62 = vld [vmem:[%s2271_s5 + $0x141] sm:$0xff] }
  0x98   : > { %789 = vrot.lane.b32.xlu0 %v2481_v45, %s2179_s17  ;;  %v1136_v17 = vsel %vm1134_vm5, %v1103_v4, %v874_v61  ;;  %v1967_v61 = vld [vmem:[%s2271_s5 + $0x139] sm:$0xff] }
  0x99   : > { %v636_v12 = vpop.permute.xlu1 %635  ;;  %v564_v4 = vpack.c.bf16 %v1968_v62, %v1967_v61 }
  0x9a   : > { %v922_v16 = vpop.permute.xlu0 %921  ;;  %v959_v25 = vsel %vm953_vm0, %v2281_v7, %v636_v12 }
  0x9b   : > { %845 = vrot.lane.b32.xlu1 %v2508_v6, %s2182_s29  ;;  %v1169_v18 = vsel %vm1167_vm6, %v1136_v17, %v922_v16  ;;  %v1937_v17 = vld [vmem:[%s2271_s5 + $0x150] sm:$0xff] }
  0x9c   : > { %837 = vrot.lane.b32.xlu0 %v2512_v8, %s2182_s29  ;;  %1369 = vmatmul.mubr.bf16.vlgmr.msra.gmra.mxu0 %v1169_v18  ;;  %v1938_v18 = vld [vmem:[%s2271_s5 + $0x158] sm:$0xff] }
  0x9d   : > { %v732_v24 = vpop.permute.xlu1 %731  ;;  %2019 = vmatprep.mubr.msk.bf16.mxu0 %vm953_vm0, %v2370_v48 }
  0x9e   : > { %v684_v26 = vpop.permute.xlu0 %683 }
  0x9f   : > { %v1006_v27 = vsel %vm1002_vm1, %v959_v25, %v684_v26  ;;  %893 = vrot.lane.b32.xlu1 %v2522_v19, %s2181_s25  ;;  %v2618_v25 = vpack.c.bf16 %v1938_v18, %v1937_v17  ;;  %v2622_v26 = vpack.c.bf16 %v1906_v22, %v1905_v21  ;;  %v1912_v21 = vld [vmem:[%s2271_s5 + $0x18a] sm:$0xff] }
  0xa0   : > { %885 = vrot.lane.b32.xlu0 %v2526_v20, %s2181_s25  ;;  %v1039_v32 = vsel %vm1035_vm2, %v1006_v27, %v732_v24 }
  0xa1   : > { %v828_v29 = vpop.permute.xlu1 %827 }
  0xa2   : > { %v780_v30 = vpop.permute.xlu0 %779 }
  0xa3   : > { %v1072_v48 = vsel %vm1068_vm3, %v1039_v32, %v780_v30  ;;  %941 = vrot.lane.b32.xlu1 %v2537_v28, %s2183_s30 }
  0xa4   : > { %933 = vrot.lane.b32.xlu0 %v2400_v63, %s2183_s30  ;;  %v1105_v35 = vsel %vm1101_vm4, %v1072_v48, %v828_v29  ;;  %v1970_v29 = vld [vmem:[%s2271_s5 + $0x159] sm:$0xff] }
  0xa5   : > { %v924_v7 = vpop.permute.xlu1 %923 }
  0xa6   : > { %v876_v34 = vpop.permute.xlu0 %875 }
  0xa7   : > { %v1138_v36 = vsel %vm1134_vm5, %v1105_v35, %v876_v34  ;;  %655 = vrot.lane.b32.xlu1 %v2478_v44, %s2178_s11  ;;  %v1908_v34 = vld [vmem:[%s2271_s5 + $0x15a] sm:$0xff] }
  0xa8   : > { %647 = vrot.lane.b32.xlu0 %v2481_v45, %s2178_s11  ;;  %v1172_v37 = vsel %vm1167_vm6, %v1138_v36, %v924_v7  ;;  %v1907_v7 = vld [vmem:[%s2271_s5 + $0x152] sm:$0xff] }
  0xa9   : > { %1377 = vmatmul.mubr.bf16.gmra.mxu0 %v1172_v37  ;;  %v686_v38 = vpop.permute.xlu1 %685  ;;  %v2636_v37 = vpack.c.bf16 %v1908_v34, %v1907_v7 }
  0xaa   : > { %v638_v39 = vpop.permute.xlu0 %637  ;;  %2020 = vmatprep.mubr.msk.bf16.mxu0 %vm953_vm0, %v2384_v54  ;;  %v1904_v54 = vld [vmem:[%s2271_s5 + $0x12a] sm:$0xff] }
  0xab   : > { %v962_v41 = vsel %vm953_vm0, %v2303_v23, %v638_v39  ;;  %703 = vrot.lane.b32.xlu1 %v2508_v6, %s2180_s24  ;;  %v1903_v23 = vld [vmem:[%s2271_s5 + $0x122] sm:$0xff]  ;;  %v1972_v39 = vld [vmem:[%s2271_s5 + $0x171] sm:$0xff] }
  0xac   : > { %695 = vrot.lane.b32.xlu0 %v2512_v8, %s2180_s24  ;;  %v1008_v44 = vsel %vm1002_vm1, %v962_v41, %v686_v38  ;;  %v2574_v52 = vpack.c.bf16 %v1904_v54, %v1903_v23  ;;  %v1971_v38 = vld [vmem:[%s2271_s5 + $0x169] sm:$0xff] }
  0xad   : > { %v782_v42 = vpop.permute.xlu1 %781 }
  0xae   : > { %v734_v43 = vpop.permute.xlu0 %733 }
  0xaf   : > { %v1041_v45 = vsel %vm1035_vm2, %v1008_v44, %v734_v43  ;;  %751 = vrot.lane.b32.xlu1 %v2522_v19, %s2177_s8  ;;  %v1940_v43 = vld [vmem:[%s2271_s5 + $0x170] sm:$0xff] }
  0xb0   : > { %743 = vrot.lane.b32.xlu0 %v2526_v20, %s2177_s8  ;;  %v1074_v50 = vsel %vm1068_vm3, %v1041_v45, %v782_v42  ;;  %v1939_v42 = vld [vmem:[%s2271_s5 + $0x168] sm:$0xff]  ;;  %v566_v45 = vpack.c.bf16 %v1972_v39, %v1971_v38 }
  0xb1   : > { %v878_v46 = vpop.permute.xlu1 %877  ;;  %v2649_v54 = vpack.c.bf16 %v1940_v43, %v1939_v42 }
  0xb2   : > { %v830_v49 = vpop.permute.xlu0 %829 }
  0xb3   : > { %v1107_v51 = vsel %vm1101_vm4, %v1074_v50, %v830_v49  ;;  %799 = vrot.lane.b32.xlu1 %v2537_v28, %s2179_s17 }
  0xb4   : > { %791 = vrot.lane.b32.xlu0 %v2400_v63, %s2179_s17  ;;  %v1140_v58 = vsel %vm1134_vm5, %v1107_v51, %v878_v46 }
  0xb5   : > { %v640_v56 = vpop.permute.xlu1 %639 }
  0xb6   : > { %v926_v57 = vpop.permute.xlu0 %925  ;;  %v965_v0 = vsel %vm953_vm0, %v2344_v40, %v640_v56 }
  0xb7   : > { %847 = vrot.lane.b32.xlu1 %v2574_v52, %s2182_s29  ;;  %v1175_v33 = vsel %vm1167_vm6, %v1140_v58, %v926_v57 }
  0xb8   : > { %839 = vrot.lane.b32.xlu0 %v2408_v2, %s2182_s29  ;;  %1385 = vmatmul.mubr.bf16.gmra.mxu0 %v1175_v33 }
  0xb9   : > { %v736_v63 = vpop.permute.xlu1 %735  ;;  %2021 = vmatprep.mubr.msk.bf16.mxu0 %vm953_vm0, %v2434_v15 }
  0xba   : > { %v688_v1 = vpop.permute.xlu0 %687 }
  0xbb   : > { %v1010_v3 = vsel %vm1002_vm1, %v965_v0, %v688_v1  ;;  %895 = vrot.lane.b32.xlu1 %v2584_v59, %s2181_s25 }
  0xbc   : > { %887 = vrot.lane.b32.xlu0 %v2415_v5, %s2181_s25  ;;  %v1043_v15 = vsel %vm1035_vm2, %v1010_v3, %v736_v63  ;;  %v1941_v3 = vld [vmem:[%s2271_s5 + $0x180] sm:$0xff] }
  0xbd   : > { %v832_v2 = vpop.permute.xlu1 %831 }
  0xbe   : > { %v784_v10 = vpop.permute.xlu0 %783 }
  0xbf   : > { %v1076_v40 = vsel %vm1068_vm3, %v1043_v15, %v784_v10  ;;  %943 = vrot.lane.b32.xlu1 %v564_v4, %s2183_s30  ;;  %v1909_v10 = vld [vmem:[%s2271_s5 + $0x16a] sm:$0xff]  ;;  %v1910_v15 = vld [vmem:[%s2271_s5 + $0x172] sm:$0xff] }
  0xc0   : > { %935 = vrot.lane.b32.xlu0 %v2423_v9, %s2183_s30  ;;  %v1109_v13 = vsel %vm1101_vm4, %v1076_v40, %v832_v2 }
  0xc1   : > { %v928_v11 = vpop.permute.xlu1 %927 }
  0xc2   : > { %v880_v12 = vpop.permute.xlu0 %879 }
  0xc3   : > { %v1142_v14 = vsel %vm1134_vm5, %v1109_v13, %v880_v12  ;;  %705 = vrot.lane.b32.xlu1 %v2574_v52, %s2180_s24  ;;  %v2682_v12 = vpack.c.bf16 %v1910_v15, %v1909_v10 }
  0xc4   : > { %657 = vrot.lane.b32.xlu0 %v2537_v28, %s2178_s11  ;;  %v1178_v16 = vsel %vm1167_vm6, %v1142_v14, %v928_v11  ;;  %v1969_v28 = vld [vmem:[%s2271_s5 + $0x151] sm:$0xff]  ;;  %v1973_v14 = vld [vmem:[%s2271_s5 + $0x181] sm:$0xff] }
  0xc5   : > { %1393 = vmatmul.mubr.bf16.gmra.mxu0 %v1178_v16  ;;  %v650_v9 = vpop.permute.xlu1 %649  ;;  %v1974_v16 = vld [vmem:[%s2271_s5 + $0x189] sm:$0xff] }
  0xc6   : > { %v642_v24 = vpop.permute.xlu0 %641  ;;  %2022 = vmatprep.mubr.msk.bf16.mxu0 %vm953_vm0, %v2463_v31  ;;  %v565_v31 = vpack.c.bf16 %v1970_v29, %v1969_v28  ;;  %v980_v23 = vsel %vm953_vm0, %v2526_v20, %v650_v9  ;;  %v1911_v9 = vld [vmem:[%s2271_s5 + $0x182] sm:$0xff]  ;;  %v1975_v28 = vld [vmem:[%s2271_s5 + $0x199] sm:$0xff] }
  0xc7   : > { %801 = vrot.lane.b32.xlu1 %v564_v4, %s2179_s17  ;;  %v968_v46 = vsel %vm953_vm0, %v2366_v47, %v642_v24  ;;  %v1976_v29 = vld [vmem:[%s2271_s5 + $0x1a1] sm:$0xff] }
  0xc8   : > { %753 = vrot.lane.b32.xlu0 %v2584_v59, %s2177_s8  ;;  %v568_v7 = vpack.c.bf16 %v1976_v29, %v1975_v28 }
  0xc9   : > { %v698_v27 = vpop.permute.xlu1 %697 }
  0xca   : > { %v690_v30 = vpop.permute.xlu0 %689  ;;  %v1020_v49 = vsel %vm1002_vm1, %v980_v23, %v698_v27  ;;  %v2694_v27 = vpack.c.bf16 %v1912_v21, %v1911_v9  ;;  %v1991_v9 = vld [vmem:[%s2271_s5 + $0xda] sm:$0xff]  ;;  %v1992_v21 = vld [vmem:[%s2271_s5 + $0xe2] sm:$0xff] }
  0xcb   : > { %897 = vrot.lane.b32.xlu1 %v2618_v25, %s2181_s25  ;;  %v1012_v51 = vsel %vm1002_vm1, %v968_v46, %v690_v30 }
  0xcc   : > { %849 = vrot.lane.b32.xlu0 %v2622_v26, %s2182_s29 }
  0xcd   : > { %v746_v32 = vpop.permute.xlu1 %745 }
  0xce   : > { %v738_v48 = vpop.permute.xlu0 %737  ;;  %v1053_v53 = vsel %vm1035_vm2, %v1020_v49, %v746_v32  ;;  %v1944_v32 = vld [vmem:[%s2271_s5 + $0x1a0] sm:$0xff] }
  0xcf   : > { %659 = vrot.lane.b32.xlu1 %v564_v4, %s2178_s11  ;;  %v1045_v56 = vsel %vm1035_vm2, %v1012_v51, %v738_v48  ;;  %v1942_v4 = vld [vmem:[%s2271_s5 + $0x188] sm:$0xff] }
  0xd0   : > { %945 = vrot.lane.b32.xlu0 %v565_v31, %s2183_s30  ;;  %v519_v11 = vpack.c.bf16 %v1942_v4, %v1941_v3  ;;  %v195_v4 = vld [vmem:[%s2271_s5 + $0x90] sm:$0xff] }
  0xd1   : > { %v794_v35 = vpop.permute.xlu1 %793 }
  0xd2   : > { %v786_v36 = vpop.permute.xlu0 %785  ;;  %v1086_v57 = vsel %vm1068_vm3, %v1053_v53, %v794_v35 }
  0xd3   : > { %755 = vrot.lane.b32.xlu1 %v2618_v25, %s2177_s8  ;;  %v1078_v20 = vsel %vm1068_vm3, %v1045_v56, %v786_v36 }
  0xd4   : > { %707 = vrot.lane.b32.xlu0 %v2622_v26, %s2180_s24 }
  0xd5   : > { %v842_v41 = vpop.permute.xlu1 %841 }
  0xd6   : > { %v834_v44 = vpop.permute.xlu0 %833  ;;  %v1119_v47 = vsel %vm1101_vm4, %v1086_v57, %v842_v41 }
  0xd7   : > { %851 = vrot.lane.b32.xlu1 %v2636_v37, %s2182_s29  ;;  %v1111_v58 = vsel %vm1101_vm4, %v1078_v20, %v834_v44  ;;  %v1989_v44 = vld [vmem:[%s2271_s5 + $0xc2] sm:$0xff] }
  0xd8   : > { %803 = vrot.lane.b32.xlu0 %v565_v31, %s2179_s17 }
  0xd9   : > { %v890_v50 = vpop.permute.xlu1 %889 }
  0xda   : > { %v882_v55 = vpop.permute.xlu0 %881  ;;  %v1152_v33 = vsel %vm1134_vm5, %v1119_v47, %v890_v50 }
  0xdb   : > { %947 = vrot.lane.b32.xlu1 %v566_v45, %s2183_s30  ;;  %v1144_v62 = vsel %vm1134_vm5, %v1111_v58, %v882_v55 }
  0xdc   : > { %899 = vrot.lane.b32.xlu0 %v2649_v54, %s2181_s25 }
  0xdd   : > { %v938_v61 = vpop.permute.xlu1 %937 }
  0xde   : > { %v930_v63 = vpop.permute.xlu0 %929  ;;  %v1193_v0 = vsel %vm1167_vm6, %v1152_v33, %v938_v61 }
  0xdf   : > { %v1181_v1 = vsel %vm1167_vm6, %v1144_v62, %v930_v63  ;;  %1433 = vmatmul.mubr.bf16.vlgmr.msra.gmra.mxu1 %v1193_v0  ;;  %709 = vrot.lane.b32.xlu1 %v2636_v37, %s2180_s24  ;;  %v203_v0 = vld [vmem:[%s2271_s5 + $0xf0] sm:$0xff] }
  0xe0   : > { %661 = vrot.lane.b32.xlu0 %v565_v31, %s2178_s11  ;;  %1401 = vmatmul.mubr.bf16.gmra.mxu0 %v1181_v1  ;;  %v1943_v31 = vld [vmem:[%s2271_s5 + $0x198] sm:$0xff] }
  0xe1   : > { %v652_v2 = vpop.permute.xlu1 %651  ;;  %2023 = vmatprep.mubr.msk.bf16.mxu0 %vm953_vm0, %v2512_v8  ;;  %2027 = vmatprep.mubr.msk.bf16.mxu1 %vm953_vm0, %v2508_v6  ;;  %v567_v6 = vpack.c.bf16 %v1974_v16, %v1973_v14  ;;  %v520_v35 = vpack.c.bf16 %v1944_v32, %v1943_v31  ;;  %v204_v1 = vld [vmem:[%s2271_s5 + $0xf8] sm:$0xff] }
  0xe2   : > { %v644_v40 = vpop.permute.xlu0 %643  ;;  %v983_v34 = vsel %vm953_vm0, %v2415_v5, %v652_v2  ;;  %v196_v2 = vld [vmem:[%s2271_s5 + $0x98] sm:$0xff]  ;;  %v225_v15 = vpack.c.bf16 %v204_v1, %v203_v0 }
  0xe3   : > { %805 = vrot.lane.b32.xlu1 %v566_v45, %s2179_s17  ;;  %v971_v36 = vsel %vm953_vm0, %v2395_v60, %v644_v40  ;;  %v221_v40 = vpack.c.bf16 %v196_v2, %v195_v4 }
  0xe4   : > { %757 = vrot.lane.b32.xlu0 %v2649_v54, %s2177_s8 }
  0xe5   : > { %v700_v13 = vpop.permute.xlu1 %699 }
  0xe6   : > { %v692_v17 = vpop.permute.xlu0 %691  ;;  %v1022_v38 = vsel %vm1002_vm1, %v983_v34, %v700_v13 }
  0xe7   : > { %901 = vrot.lane.b32.xlu1 %v519_v11, %s2181_s25  ;;  %v1014_v41 = vsel %vm1002_vm1, %v971_v36, %v692_v17 }
  0xe8   : > { %853 = vrot.lane.b32.xlu0 %v2682_v12, %s2182_s29 }
  0xe9   : > { %v748_v8 = vpop.permute.xlu1 %747 }
  0xea   : > { %v740_v18 = vpop.permute.xlu0 %739  ;;  %v1055_v42 = vsel %vm1035_vm2, %v1022_v38, %v748_v8 }
  0xeb   : > { %663 = vrot.lane.b32.xlu1 %v566_v45, %s2178_s11  ;;  %v1990_v45 = vld [vmem:[%s2271_s5 + $0xca] sm:$0xff]  ;;  %v1047_v23 = vsel %vm1035_vm2, %v1014_v41, %v740_v18 }
  0xec   : > { %949 = vrot.lane.b32.xlu0 %v567_v6, %s2183_s30  ;;  %v607_v53 = vpack.c.bf16 %v1990_v45, %v1989_v44  ;;  %v205_v45 = vld [vmem:[%s2271_s5 + $0x108] sm:$0xff] }
  0xed   : > { %v796_v22 = vpop.permute.xlu1 %795 }
  0xee   : > { %v788_v24 = vpop.permute.xlu0 %787  ;;  %v1088_v5 = vsel %vm1068_vm3, %v1055_v42, %v796_v22 }
  0xef   : > { %759 = vrot.lane.b32.xlu1 %v519_v11, %s2177_s8  ;;  %v1080_v46 = vsel %vm1068_vm3, %v1047_v23, %v788_v24  ;;  %v206_v23 = vld [vmem:[%s2271_s5 + $0x110] sm:$0xff]  ;;  %s2038_s8 = sshll.u32 %s2260_s26, 8  ;;  %s169_s26 = sand.u32 1, %s2166_s13  }
  0xf0   : > { %711 = vrot.lane.b32.xlu0 %v2682_v12, %s2180_s24  ;;  %s2800_s20 = scalar_lea.vmem %s3028_s2, %s2038_s8  ;;  %s2035_s24 = sshll.u32 %s2226_s16, 5 }
  0xf1   : > { %v844_v30 = vpop.permute.xlu1 %843  ;;  %s1709_s4 = scalar_lea.sflag [#allocation3], %s169_s26  ;;  %s2184_s16 = smov [#allocation2]  }
  0xf2   : > { %v836_v48 = vpop.permute.xlu0 %835  ;;  %v1121_v60 = vsel %vm1101_vm4, %v1088_v5, %v844_v30  ;;  %s2118_s7 = sshll.u32 %s2184_s16, 4  ;;  %s2119_s7 = int_to_ptr.vmem [resolvable:$false] %s2118_s7 }
  0xf3   : > { %855 = vrot.lane.b32.xlu1 %v2694_v27, %s2182_s29  ;;  %v1113_v49 = vsel %vm1101_vm4, %v1080_v46, %v836_v48  ;;  %v608_v48 = vpack.c.bf16 %v1992_v21, %v1991_v9  ;;  %v197_v46 = vld [vmem:[%s2271_s5 + $0xa8] sm:$0xff]  ;;  %s2120_s9 = scalar_lea.vmem %s2119_s7, 64 }
  0xf4   : > { %807 = vrot.lane.b32.xlu0 %v567_v6, %s2179_s17 }
  0xf5   : > { %v892_v39 = vpop.permute.xlu1 %891 }
  0xf6   : > { %v884_v43 = vpop.permute.xlu0 %883  ;;  %v1154_v50 = vsel %vm1134_vm5, %v1121_v60, %v892_v39  ;;  %v198_v60 = vld [vmem:[%s2271_s5 + $0xb0] sm:$0xff] }
  0xf7   : > { %951 = vrot.lane.b32.xlu1 %v568_v7, %s2183_s30  ;;  %v1146_v55 = vsel %vm1134_vm5, %v1113_v49, %v884_v43  ;;  %s2991_s30 = scalar_lea.hbm %s3029_s3, %s2035_s24 }
  0xf8   : > { %903 = vrot.lane.b32.xlu0 %v520_v35, %s2181_s25 }
  0xf9   : > { %v940_v51 = vpop.permute.xlu1 %939 }
  0xfa   : > { %v932_v56 = vpop.permute.xlu0 %931  ;;  %v1196_v57 = vsel %vm1167_vm6, %v1154_v50, %v940_v51  ;;  %v226_v50 = vpack.c.bf16 %v206_v23, %v205_v45  ;;  %v222_v51 = vpack.c.bf16 %v198_v60, %v197_v46 }
  0xfb   : > { %v1184_v20 = vsel %vm1167_vm6, %v1146_v55, %v932_v56  ;;  %1441 = vmatmul.mubr.bf16.gmra.mxu1 %v1196_v57 }
  0xfc   : > { %1409 = vmatmul.mubr.bf16.gmra.mxu0 %v1184_v20  ;;  %2028 = vmatprep.mubr.msk.bf16.mxu1 %vm953_vm0, %v2574_v52 }
  0xfd   : > { %v654_v47 = vpop.permute.xlu1 %653  ;;  %2024 = vmatprep.mubr.msk.bf16.mxu0 %vm953_vm0, %v607_v53 }
  0xfe   : > { %v646_v58 = vpop.permute.xlu0 %645  ;;  %v986_v13 = vsel %vm953_vm0, %v225_v15, %v654_v47 }
  0xff   : > { %v974_v14 = vsel %vm953_vm0, %v221_v40, %v646_v58 }
 0x101   : > { %v702_v33 = vpop.permute.xlu1 %701 }
 0x102   : > { %v694_v61 = vpop.permute.xlu0 %693  ;;  %v1024_v16 = vsel %vm1002_vm1, %v986_v13, %v702_v33 }
 0x103   : > { %v1016_v6 = vsel %vm1002_vm1, %v974_v14, %v694_v61 }
 0x105   : > { %v750_v62 = vpop.permute.xlu1 %749 }
 0x106   : > { %v742_v63 = vpop.permute.xlu0 %741  ;;  %v1057_v8 = vsel %vm1035_vm2, %v1024_v16, %v750_v62 }
 0x107   : > { %v1049_v22 = vsel %vm1035_vm2, %v1016_v6, %v742_v63 }
 0x109   : > { %v798_v3 = vpop.permute.xlu1 %797 }
 0x10a   : > { %v790_v10 = vpop.permute.xlu0 %789  ;;  %v1090_v24 = vsel %vm1068_vm3, %v1057_v8, %v798_v3 }
 0x10b   : > { %v1082_v28 = vsel %vm1068_vm3, %v1049_v22, %v790_v10 }
 0x10d   : > { %v846_v11 = vpop.permute.xlu1 %845 }
 0x10e   : > { %v838_v52 = vpop.permute.xlu0 %837  ;;  %v1123_v29 = vsel %vm1101_vm4, %v1090_v24, %v846_v11 }
 0x10f   : > { %v1115_v30 = vsel %vm1101_vm4, %v1082_v28, %v838_v52 }
 0x111   : > { %v894_v17 = vpop.permute.xlu1 %893 }
 0x112   : > { %v886_v18 = vpop.permute.xlu0 %885  ;;  %v1156_v31 = vsel %vm1134_vm5, %v1123_v29, %v894_v17 }
 0x113   : > { %v1148_v7 = vsel %vm1134_vm5, %v1115_v30, %v886_v18 }
 0x115   : > { %v942_v32 = vpop.permute.xlu1 %941 }
 0x116   : > { %v934_v34 = vpop.permute.xlu0 %933  ;;  %v1199_v35 = vsel %vm1167_vm6, %v1156_v31, %v942_v32 }
 0x117   : > { %v1187_v36 = vsel %vm1167_vm6, %v1148_v7, %v934_v34  ;;  %1449 = vmatmul.mubr.bf16.gmra.mxu1 %v1199_v35 }
 0x118   : > { %1417 = vmatmul.mubr.bf16.gmra.mxu0 %v1187_v36  ;;  %2029 = vmatprep.mubr.msk.bf16.mxu1 %vm953_vm0, %v2622_v26 }
 0x119   : > { %v656_v38 = vpop.permute.xlu1 %655  ;;  %2025 = vmatprep.mubr.msk.bf16.mxu0 %vm953_vm0, %v608_v48 }
 0x11a   : > { %v648_v39 = vpop.permute.xlu0 %647  ;;  %v989_v26 = vsel %vm953_vm0, %v226_v50, %v656_v38 }
 0x11b   : > { %v977_v56 = vsel %vm953_vm0, %v222_v51, %v648_v39 }
 0x11d   : > { %v704_v41 = vpop.permute.xlu1 %703 }
 0x11e   : > { %v696_v42 = vpop.permute.xlu0 %695  ;;  %v1026_v57 = vsel %vm1002_vm1, %v989_v26, %v704_v41 }
 0x11f   : > { %v1018_v47 = vsel %vm1002_vm1, %v977_v56, %v696_v42 }
 0x121   : > { %v752_v43 = vpop.permute.xlu1 %751 }
 0x122   : > { %v744_v44 = vpop.permute.xlu0 %743  ;;  %v1059_v58 = vsel %vm1035_vm2, %v1026_v57, %v752_v43 }
 0x123   : > { %v1051_v61 = vsel %vm1035_vm2, %v1018_v47, %v744_v44 }
 0x125   : > { %v800_v5 = vpop.permute.xlu1 %799 }
 0x126   : > { %v792_v49 = vpop.permute.xlu0 %791  ;;  %v1092_v62 = vsel %vm1068_vm3, %v1059_v58, %v800_v5 }
 0x127   : > { %v1084_v63 = vsel %vm1068_vm3, %v1051_v61, %v792_v49 }
 0x129   : > { %v848_v53 = vpop.permute.xlu1 %847 }
 0x12a   : > { %v840_v55 = vpop.permute.xlu0 %839  ;;  %v1125_v0 = vsel %vm1101_vm4, %v1092_v62, %v848_v53 }
 0x12b   : > { %v1117_v1 = vsel %vm1101_vm4, %v1084_v63, %v840_v55 }
 0x12d   : > { %v896_v20 = vpop.permute.xlu1 %895 }
 0x12e   : > { %v888_v33 = vpop.permute.xlu0 %887  ;;  %v1158_v3 = vsel %vm1134_vm5, %v1125_v0, %v896_v20 }
 0x12f   : > { %v1150_v2 = vsel %vm1134_vm5, %v1117_v1, %v888_v33 }
 0x131   : > { %v944_v4 = vpop.permute.xlu1 %943 }
 0x132   : > { %v936_v10 = vpop.permute.xlu0 %935  ;;  %v1202_v15 = vsel %vm1167_vm6, %v1158_v3, %v944_v4 }
 0x133   : > { %v1190_v40 = vsel %vm1167_vm6, %v1150_v2, %v936_v10  ;;  %1457 = vmatmul.mubr.bf16.gmra.mxu1 %v1202_v15 }
 0x134   : > { %1425 = vmatmul.mubr.bf16.gmra.mxu0 %v1190_v40  ;;  %2030 = vmatprep.mubr.msk.bf16.mxu1 %vm953_vm0, %v2636_v37 }
 0x135   : > { %v706_v11 = vpop.permute.xlu1 %705 }
 0x136   : > { %v658_v52 = vpop.permute.xlu0 %657 }
 0x137   : > { %v992_v13 = vsel %vm953_vm0, %v2522_v19, %v658_v52 }
 0x138   : > { %v1028_v16 = vsel %vm1002_vm1, %v992_v13, %v706_v11 }
 0x139   : > { %v802_v14 = vpop.permute.xlu1 %801 }
 0x13a   : > { %v754_v17 = vpop.permute.xlu0 %753 }
 0x13b   : > { %v1061_v6 = vsel %vm1035_vm2, %v1028_v16, %v754_v17 }
 0x13c   : > { %v1094_v18 = vsel %vm1068_vm3, %v1061_v6, %v802_v14 }
 0x13d   : > { %v898_v8 = vpop.permute.xlu1 %897 }
 0x13e   : > { %v850_v9 = vpop.permute.xlu0 %849 }
 0x13f   : > { %v1127_v21 = vsel %vm1101_vm4, %v1094_v18, %v850_v9 }
 0x140   : > { %v1160_v37 = vsel %vm1134_vm5, %v1127_v21, %v898_v8 }
 0x141   : > { %v660_v22 = vpop.permute.xlu1 %659 }
 0x142   : > { %v946_v24 = vpop.permute.xlu0 %945  ;;  %v995_v29 = vsel %vm953_vm0, %v2584_v59, %v660_v22 }
 0x143   : > { %v1205_v28 = vsel %vm1167_vm6, %v1160_v37, %v946_v24 }
 0x144   : > { %1465 = vmatmul.mubr.bf16.gmra.mxu1 %v1205_v28 }
 0x145   : > { %v756_v19 = vpop.permute.xlu1 %755  ;;  %2031 = vmatprep.mubr.msk.bf16.mxu1 %vm953_vm0, %v2682_v12 }
 0x146   : > { %v708_v30 = vpop.permute.xlu0 %707 }
 0x147   : > { %v1030_v31 = vsel %vm1002_vm1, %v995_v29, %v708_v30 }
 0x148   : > { %v1063_v48 = vsel %vm1035_vm2, %v1030_v31, %v756_v19 }
 0x149   : > { %v852_v32 = vpop.permute.xlu1 %851 }
 0x14a   : > { %v804_v7 = vpop.permute.xlu0 %803 }
 0x14b   : > { %v1096_v34 = vsel %vm1068_vm3, %v1063_v48, %v804_v7 }
 0x14c   : > { %v1129_v36 = vsel %vm1101_vm4, %v1096_v34, %v852_v32 }
 0x14d   : > { %v948_v35 = vpop.permute.xlu1 %947 }
 0x14e   : > { %v900_v38 = vpop.permute.xlu0 %899 }
 0x14f   : > { %v1162_v39 = vsel %vm1134_vm5, %v1129_v36, %v900_v38 }
 0x150   : > { %v1208_v12 = vsel %vm1167_vm6, %v1162_v39, %v948_v35 }
 0x151   : > { %1473 = vmatmul.mubr.bf16.gmra.mxu1 %v1208_v12  ;;  %v710_v59 = vpop.permute.xlu1 %709 }
 0x152   : > { %v662_v41 = vpop.permute.xlu0 %661  ;;  %2032 = vmatprep.mubr.msk.bf16.mxu1 %vm953_vm0, %v2694_v27  ;;  %v2007_v27 = vld [vmem:[%s2271_s5 + $0x19a] sm:$0xff] }
 0x153   : > { %v998_v42 = vsel %vm953_vm0, %v2618_v25, %v662_v41  ;;  %v2008_v25 = vld [vmem:[%s2271_s5 + $0x1a2] sm:$0xff]  ;;  %s1813_s5 = sshll.u32 %s169_s26, 1 }
 0x154   : > { %v1032_v44 = vsel %vm1002_vm1, %v998_v42, %v710_v59  ;;  %v616_v53 = vpack.c.bf16 %v2008_v25, %v2007_v27  ;;  %s171_s25 = scalar_lea.vmem [#allocation2], %s1813_s5 }
 0x155   : > { %v806_v43 = vpop.permute.xlu1 %805  ;;  %s1725_s27 = sshll.u32 %s171_s25, 4  ;;  %s1726_s27 = int_to_ptr.vmem [resolvable:$true] %s1725_s27 }
 0x156   : > { %v758_v45 = vpop.permute.xlu0 %757  ;;  %s2114_s6 = scalar_lea.vmem %s1726_s27, 32  ;;  %p2121_p0 = scmp.lt.s32.totalorder %s1726_s27, %s2119_s7 }
 0x157   : > { %v1065_v23 = vsel %vm1035_vm2, %v1032_v44, %v758_v45  ;;  %p2115_p11 = scmp.ne.s32.totalorder %s1726_s27, %s2114_s6  ;;  %p2122_p1 = scmp.lt.s32.totalorder %s2120_s9, %s2114_s6 }
 0x158   : > { %v1098_v46 = vsel %vm1068_vm3, %v1065_v23, %v806_v43 }
 0x159   : > { %v902_v5 = vpop.permute.xlu1 %901  ;;  %p2116_p12 = pnand %p2115_p11, %p2243_p5  ;;  %p2123_p2 = por %p2122_p1, %p2121_p0 }
 0x15a   : > { %v854_v60 = vpop.permute.xlu0 %853 }
 0x15b   : > { %v1131_v49 = vsel %vm1101_vm4, %v1098_v46, %v854_v60  ;;  %p2117_p13 = pneg %p2116_p12 }
 0x15c   : > { %v1370_v50 = vpop.f32.mrf.mxu0  ;;  %v1164_v55 = vsel %vm1134_vm5, %v1131_v49, %v902_v5 }
 0x15d   : > { %1497 = vst.msk [vmem:[%s2800_s20] sm:$0xff] %vm953_vm0, %v1370_v50  ;;  %v664_v51 = vpop.permute.xlu1 %663  ;;  %v1598_v57 = vmul.f32 %v1370_v50, %v1370_v50  ;;  %v1529_v58 = vsel %vm953_vm0, %v1370_v50, 0.0  ;;  %p2124_p3 = pnand %p2123_p2, %p2117_p13 }
 0x15e   : > { %v950_v26 = vpop.permute.xlu0 %949  ;;  %v1372_v56 = vpop.f32.mrf.mxu0  ;;  %v1001_v63 = vsel %vm953_vm0, %v2649_v54, %v664_v51 }
 0x15f   : > { %v1211_v20 = vsel %vm1167_vm6, %v1164_v55, %v950_v26  ;;  %v1630_v4 = vsel %vm953_vm0, %v1598_v57, 0.0 }
 0x160   : > { %v1373_v47 = vpop.f32.mrf.mxu0  ;;  %1481 = vmatmul.mubr.bf16.gmra.mxu1 %v1211_v20 }
 0x161   : > { %1498 = vst.msk [vmem:[%s2800_s20 + $0x8] sm:$0xff] %vm953_vm0, %v1373_v47  ;;  %v1530_v33 = vsel %vm953_vm0, %v1373_v47, 0.0  ;;  %v1599_v61 = vmul.f32 %v1373_v47, %v1373_v47  ;;  %v760_v62 = vpop.permute.xlu1 %759  ;;  %2033 = vmatprep.mubr.msk.bf16.mxu1 %vm953_vm0, %v616_v53 }
 0x162   : > { %v1531_v0 = vadd.f32 %v1530_v33, %v1529_v58  ;;  %v712_v1 = vpop.permute.xlu0 %711  ;;  %v1375_v3 = vpop.f32.mrf.mxu0 }
 0x163   : > { %v1631_v2 = vsel %vm953_vm0, %v1599_v61, 0.0  ;;  %v1034_v10 = vsel %vm1002_vm1, %v1001_v63, %v712_v1 }
 0x164   : > { %v1632_v15 = vadd.f32 %v1631_v2, %v1630_v4  ;;  %v1067_v11 = vsel %vm1035_vm2, %v1034_v10, %v760_v62 }
 0x165   : > { %v856_v40 = vpop.permute.xlu1 %855 }
 0x166   : > { %v808_v52 = vpop.permute.xlu0 %807 }
 0x167   : > { %v1100_v13 = vsel %vm1068_vm3, %v1067_v11, %v808_v52 }
 0x168   : > { %v1133_v54 = vsel %vm1101_vm4, %v1100_v13, %v856_v40 }
 0x169   : > { %v1378_v14 = vpop.f32.mrf.mxu0  ;;  %v952_v16 = vpop.permute.xlu1 %951 }
 0x16a   : > { %1499 = vst.msk [vmem:[%s2800_s20 + $0x10] sm:$0xff] %vm953_vm0, %v1378_v14  ;;  %v1532_v17 = vsel %vm953_vm0, %v1378_v14, 0.0  ;;  %v1600_v6 = vmul.f32 %v1378_v14, %v1378_v14  ;;  %v904_v8 = vpop.permute.xlu0 %903 }
 0x16b   : > { %v1533_v18 = vadd.f32 %v1532_v17, %v1531_v0  ;;  %v1166_v9 = vsel %vm1134_vm5, %v1133_v54, %v904_v8  ;;  %v1380_v21 = vpop.f32.mrf.mxu0 }
 0x16c   : > { %v1633_v22 = vsel %vm953_vm0, %v1600_v6, 0.0  ;;  %v1214_v37 = vsel %vm1167_vm6, %v1166_v9, %v952_v16 }
 0x16d   : > { %v1634_v24 = vadd.f32 %v1633_v22, %v1632_v15  ;;  %v1381_v28 = vpop.f32.mrf.mxu0  ;;  %1489 = vmatmul.mubr.bf16.gmra.mxu1 %v1214_v37 }
 0x16e   : > { %1500 = vst.msk [vmem:[%s2800_s20 + $0x18] sm:$0xff] %vm953_vm0, %v1381_v28  ;;  %v1534_v19 = vsel %vm953_vm0, %v1381_v28, 0.0  ;;  %v1601_v29 = vmul.f32 %v1381_v28, %v1381_v28 }
 0x16f   : > { %v1535_v30 = vadd.f32 %v1534_v19, %v1533_v18  ;;  %v1383_v31 = vpop.f32.mrf.mxu0 }
 0x170   : > { %v1635_v32 = vsel %vm953_vm0, %v1601_v29, 0.0 }
 0x171   : > { %v1636_v48 = vadd.f32 %v1635_v32, %v1634_v24 }
 0x178   : > { %v1386_v7 = vpop.f32.mrf.mxu0 }
 0x179   : > { %1501 = vst.msk [vmem:[%s2800_s20 + $0x20] sm:$0xff] %vm953_vm0, %v1386_v7  ;;  %v1536_v34 = vsel %vm953_vm0, %v1386_v7, 0.0  ;;  %v1602_v35 = vmul.f32 %v1386_v7, %v1386_v7 }
 0x17a   : > { %v1537_v36 = vadd.f32 %v1536_v34, %v1535_v30  ;;  %v1388_v38 = vpop.f32.mrf.mxu0 }
 0x17b   : > { %v1637_v39 = vsel %vm953_vm0, %v1602_v35, 0.0 }
 0x17c   : > { %v1638_v12 = vadd.f32 %v1637_v39, %v1636_v48  ;;  %v1389_v59 = vpop.f32.mrf.mxu0 }
 0x17d   : > { %1502 = vst.msk [vmem:[%s2800_s20 + $0x28] sm:$0xff] %vm953_vm0, %v1389_v59  ;;  %v1538_v41 = vsel %vm953_vm0, %v1389_v59, 0.0  ;;  %v1603_v42 = vmul.f32 %v1389_v59, %v1389_v59 }
 0x17e   : > { %v1539_v43 = vadd.f32 %v1538_v41, %v1537_v36  ;;  %v1391_v44 = vpop.f32.mrf.mxu0 }
 0x17f   : > { %v1639_v45 = vsel %vm953_vm0, %v1603_v42, 0.0 }
 0x180   : > { %v1640_v23 = vadd.f32 %v1639_v45, %v1638_v12 }
 0x185   : > { %v1394_v5 = vpop.f32.mrf.mxu0 }
 0x186   : > { %1503 = vst.msk [vmem:[%s2800_s20 + $0x30] sm:$0xff] %vm953_vm0, %v1394_v5  ;;  %v1540_v46 = vsel %vm953_vm0, %v1394_v5, 0.0  ;;  %v1604_v60 = vmul.f32 %v1394_v5, %v1394_v5 }
 0x187   : > { %v1541_v27 = vadd.f32 %v1540_v46, %v1539_v43  ;;  %v1396_v25 = vpop.f32.mrf.mxu0 }
 0x188   : > { %v1641_v49 = vsel %vm953_vm0, %v1604_v60, 0.0 }
 0x189   : > { %v1642_v50 = vadd.f32 %v1641_v49, %v1640_v23  ;;  %v1397_v51 = vpop.f32.mrf.mxu0 }
 0x18a   : > { %1504 = vst.msk [vmem:[%s2800_s20 + $0x38] sm:$0xff] %vm953_vm0, %v1397_v51  ;;  %v1542_v53 = vsel %vm953_vm0, %v1397_v51, 0.0  ;;  %v1605_v55 = vmul.f32 %v1397_v51, %v1397_v51 }
 0x18b   : > { %v1543_v26 = vadd.f32 %v1542_v53, %v1541_v27  ;;  %v1399_v56 = vpop.f32.mrf.mxu0 }
 0x18c   : > { %v1643_v57 = vsel %vm953_vm0, %v1605_v55, 0.0 }
 0x18d   : > { %v1644_v20 = vadd.f32 %v1643_v57, %v1642_v50 }
 0x19f   : > { %v2848_v47 = vpop.f32.mrf.mxu1 }
 0x1a0   : > { %v1402_v58 = vpop.f32.mrf.mxu0  ;;  %1513 = vst.msk [vmem:[%s2800_s20 + $0x80] sm:$0xff] %vm953_vm0, %v2848_v47 }
 0x1a1   : > { %1505 = vst.msk [vmem:[%s2800_s20 + $0x40] sm:$0xff] %vm953_vm0, %v1402_v58  ;;  %v1544_v33 = vsel %vm953_vm0, %v1402_v58, 0.0  ;;  %v1606_v61 = vmul.f32 %v1402_v58, %v1402_v58  ;;  %v1436_v62 = vpop.f32.mrf.mxu1  ;;  %v1614_v58 = vmul.f32 %v2848_v47, %v2848_v47 }
 0x1a2   : > { %v1545_v63 = vadd.f32 %v1544_v33, %v1543_v26  ;;  %v1404_v0 = vpop.f32.mrf.mxu0 }
 0x1a3   : > { %v1645_v1 = vsel %vm953_vm0, %v1606_v61, 0.0  ;;  %v2857_v3 = vpop.f32.mrf.mxu1 }
 0x1a4   : > { %v1646_v4 = vadd.f32 %v1645_v1, %v1644_v20  ;;  %v1405_v2 = vpop.f32.mrf.mxu0  ;;  %1514 = vst.msk [vmem:[%s2800_s20 + $0x88] sm:$0xff] %vm953_vm0, %v2857_v3 }
 0x1a5   : > { %1506 = vst.msk [vmem:[%s2800_s20 + $0x48] sm:$0xff] %vm953_vm0, %v1405_v2  ;;  %v1546_v10 = vsel %vm953_vm0, %v1405_v2, 0.0  ;;  %v1607_v15 = vmul.f32 %v1405_v2, %v1405_v2  ;;  %v1439_v40 = vpop.f32.mrf.mxu1  ;;  %v1615_v2 = vmul.f32 %v2857_v3, %v2857_v3 }
 0x1a6   : > { %v1547_v11 = vadd.f32 %v1546_v10, %v1545_v63  ;;  %v1407_v52 = vpop.f32.mrf.mxu0 }
 0x1a7   : > { %v1647_v13 = vsel %vm953_vm0, %v1607_v15, 0.0  ;;  %v1562_v52 = vsel %vm953_vm0, %v2857_v3, 0.0 }
 0x1a8   : > { %v1648_v14 = vadd.f32 %v1647_v13, %v1646_v4  ;;  %v1560_v4 = vsel %vm953_vm0, %v2848_v47, 0.0 }
 0x1bb   : > { %v2866_v16 = vpop.f32.mrf.mxu1 }
 0x1bc   : > { %v1410_v54 = vpop.f32.mrf.mxu0  ;;  %1515 = vst.msk [vmem:[%s2800_s20 + $0x90] sm:$0xff] %vm953_vm0, %v2866_v16  ;;  %v1616_v13 = vmul.f32 %v2866_v16, %v2866_v16  ;;  %v1564_v47 = vsel %vm953_vm0, %v2866_v16, 0.0 }
 0x1bd   : > { %1507 = vst.msk [vmem:[%s2800_s20 + $0x50] sm:$0xff] %vm953_vm0, %v1410_v54  ;;  %v1548_v17 = vsel %vm953_vm0, %v1410_v54, 0.0  ;;  %v1608_v6 = vmul.f32 %v1410_v54, %v1410_v54  ;;  %v1444_v8 = vpop.f32.mrf.mxu1 }
 0x1be   : > { %v1549_v18 = vadd.f32 %v1548_v17, %v1547_v11  ;;  %v1412_v9 = vpop.f32.mrf.mxu0  ;;  %v1661_v11 = vsel %vm953_vm0, %v1614_v58, 0.0  ;;  %v1663_v17 = vsel %vm953_vm0, %v1615_v2, 0.0 }
 0x1bf   : > { %v1649_v21 = vsel %vm953_vm0, %v1608_v6, 0.0  ;;  %v2875_v22 = vpop.f32.mrf.mxu1  ;;  %v1665_v9 = vsel %vm953_vm0, %v1616_v13, 0.0 }
 0x1c0   : > { %v1650_v37 = vadd.f32 %v1649_v21, %v1648_v14  ;;  %v1413_v24 = vpop.f32.mrf.mxu0  ;;  %1516 = vst.msk [vmem:[%s2800_s20 + $0x98] sm:$0xff] %vm953_vm0, %v2875_v22  ;;  %v1617_v6 = vmul.f32 %v2875_v22, %v2875_v22  ;;  %v1566_v3 = vsel %vm953_vm0, %v2875_v22, 0.0 }
 0x1c1   : > { %1508 = vst.msk [vmem:[%s2800_s20 + $0x58] sm:$0xff] %vm953_vm0, %v1413_v24  ;;  %v1550_v28 = vsel %vm953_vm0, %v1413_v24, 0.0  ;;  %v1609_v19 = vmul.f32 %v1413_v24, %v1413_v24  ;;  %v1447_v29 = vpop.f32.mrf.mxu1 }
 0x1c2   : > { %v1551_v30 = vadd.f32 %v1550_v28, %v1549_v18  ;;  %v1415_v31 = vpop.f32.mrf.mxu0  ;;  %v1667_v28 = vsel %vm953_vm0, %v1617_v6, 0.0 }
 0x1c3   : > { %v1651_v32 = vsel %vm953_vm0, %v1609_v19, 0.0 }
 0x1c4   : > { %v1652_v48 = vadd.f32 %v1651_v32, %v1650_v37 }
 0x1d7   : > { %v2884_v7 = vpop.f32.mrf.mxu1 }
 0x1d8   : > { %v1418_v34 = vpop.f32.mrf.mxu0  ;;  %1517 = vst.msk [vmem:[%s2800_s20 + $0xa0] sm:$0xff] %vm953_vm0, %v2884_v7  ;;  %v1618_v21 = vmul.f32 %v2884_v7, %v2884_v7  ;;  %v1568_v16 = vsel %vm953_vm0, %v2884_v7, 0.0 }
 0x1d9   : > { %1509 = vst.msk [vmem:[%s2800_s20 + $0x60] sm:$0xff] %vm953_vm0, %v1418_v34  ;;  %v1452_v35 = vpop.f32.mrf.mxu1  ;;  %v1610_v41 = vmul.f32 %v1418_v34, %v1418_v34  ;;  %v1552_v42 = vsel %vm953_vm0, %v1418_v34, 0.0 }
 0x1da   : > { %v1420_v36 = vpop.f32.mrf.mxu0  ;;  %v1553_v5 = vadd.f32 %v1552_v42, %v1551_v30  ;;  %v1669_v22 = vsel %vm953_vm0, %v1618_v21, 0.0 }
 0x1db   : > { %v2891_v38 = vpop.f32.mrf.mxu1  ;;  %v1653_v44 = vsel %vm953_vm0, %v1610_v41, 0.0 }
 0x1dc   : > { %v1421_v39 = vpop.f32.mrf.mxu0  ;;  %1518 = vst.msk [vmem:[%s2800_s20 + $0xa8] sm:$0xff] %vm953_vm0, %v2891_v38  ;;  %v1654_v50 = vadd.f32 %v1653_v44, %v1652_v48  ;;  %v1619_v19 = vmul.f32 %v2891_v38, %v2891_v38  ;;  %v1570_v32 = vsel %vm953_vm0, %v2891_v38, 0.0 }
 0x1dd   : > { %1510 = vst.msk [vmem:[%s2800_s20 + $0x68] sm:$0xff] %vm953_vm0, %v1421_v39  ;;  %v1455_v12 = vpop.f32.mrf.mxu1  ;;  %v1611_v43 = vmul.f32 %v1421_v39, %v1421_v39  ;;  %v1554_v45 = vsel %vm953_vm0, %v1421_v39, 0.0 }
 0x1de   : > { %v1423_v59 = vpop.f32.mrf.mxu0  ;;  %v1555_v51 = vadd.f32 %v1554_v45, %v1553_v5  ;;  %v1671_v7 = vsel %vm953_vm0, %v1619_v19, 0.0 }
 0x1df   : > { %v1655_v60 = vsel %vm953_vm0, %v1611_v43, 0.0 }
 0x1e0   : > { %v1656_v56 = vadd.f32 %v1655_v60, %v1654_v50 }
 0x1f3   : > { %v2901_v23 = vpop.f32.mrf.mxu1 }
 0x1f4   : > { %v1426_v46 = vpop.f32.mrf.mxu0  ;;  %1519 = vst.msk [vmem:[%s2800_s20 + $0xb0] sm:$0xff] %vm953_vm0, %v2901_v23  ;;  %v1620_v43 = vmul.f32 %v2901_v23, %v2901_v23  ;;  %v1572_v44 = vsel %vm953_vm0, %v2901_v23, 0.0 }
 0x1f5   : > { %1511 = vst.msk [vmem:[%s2800_s20 + $0x70] sm:$0xff] %vm953_vm0, %v1426_v46  ;;  %v1556_v27 = vsel %vm953_vm0, %v1426_v46, 0.0  ;;  %v1612_v25 = vmul.f32 %v1426_v46, %v1426_v46  ;;  %v1460_v49 = vpop.f32.mrf.mxu1 }
 0x1f6   : > { %v1428_v53 = vpop.f32.mrf.mxu0  ;;  %v1557_v57 = vadd.f32 %v1556_v27, %v1555_v51  ;;  %v1673_v5 = vsel %vm953_vm0, %v1620_v43, 0.0 }
 0x1f7   : > { %v1657_v55 = vsel %vm953_vm0, %v1612_v25, 0.0  ;;  %v1461_v26 = vpop.f32.mrf.mxu1 }
 0x1f8   : > { %v1429_v20 = vpop.f32.mrf.mxu0  ;;  %1520 = vst.msk [vmem:[%s2800_s20 + $0xb8] sm:$0xff] %vm953_vm0, %v1461_v26  ;;  %v1658_v63 = vadd.f32 %v1657_v55, %v1656_v56  ;;  %v1621_v46 = vmul.f32 %v1461_v26, %v1461_v26  ;;  %v1574_v27 = vsel %vm953_vm0, %v1461_v26, 0.0 }
 0x1f9   : > { %1512 = vst.msk [vmem:[%s2800_s20 + $0x78] sm:$0xff] %vm953_vm0, %v1429_v20  ;;  %v1558_v33 = vsel %vm953_vm0, %v1429_v20, 0.0  ;;  %v1613_v61 = vmul.f32 %v1429_v20, %v1429_v20  ;;  %v1463_v62 = vpop.f32.mrf.mxu1 }
 0x1fa   : > { %v1559_v0 = vadd.f32 %v1558_v33, %v1557_v57  ;;  %v1431_v1 = vpop.f32.mrf.mxu0  ;;  %v1675_v49 = vsel %vm953_vm0, %v1621_v46, 0.0 }
 0x1fb   : > { %v1659_v10 = vsel %vm953_vm0, %v1613_v61, 0.0 }
 0x1fc   : > { %v1561_v15 = vadd.f32 %v1560_v4, %v1559_v0  ;;  %v1660_v40 = vadd.f32 %v1659_v10, %v1658_v63 }
 0x1fe   : > { %v1563_v14 = vadd.f32 %v1562_v52, %v1561_v15  ;;  %v1662_v54 = vadd.f32 %v1661_v11, %v1660_v40 }
 0x200   : > { %v1565_v8 = vadd.f32 %v1564_v47, %v1563_v14  ;;  %v1664_v18 = vadd.f32 %v1663_v17, %v1662_v54 }
 0x202   : > { %v1666_v37 = vadd.f32 %v1665_v9, %v1664_v18  ;;  %v1567_v24 = vadd.f32 %v1566_v3, %v1565_v8 }
 0x204   : > { %v1569_v29 = vadd.f32 %v1568_v16, %v1567_v24  ;;  %v1668_v30 = vadd.f32 %v1667_v28, %v1666_v37  ;;  %v1466_v31 = vpop.f32.mrf.mxu1 }
 0x205   : > { %1521 = vst.msk [vmem:[%s2800_s20 + $0xc0] sm:$0xff] %vm953_vm0, %v1466_v31  ;;  %v1622_v50 = vmul.f32 %v1466_v31, %v1466_v31  ;;  %v1576_v55 = vsel %vm953_vm0, %v1466_v31, 0.0 }
 0x206   : > { %v1571_v48 = vadd.f32 %v1570_v32, %v1569_v29  ;;  %v1670_v34 = vadd.f32 %v1669_v22, %v1668_v30  ;;  %v1468_v35 = vpop.f32.mrf.mxu1 }
 0x207   : > { %v1677_v57 = vsel %vm953_vm0, %v1622_v50, 0.0 }
 0x208   : > { %v1672_v36 = vadd.f32 %v1671_v7, %v1670_v34  ;;  %v1469_v39 = vpop.f32.mrf.mxu1  ;;  %v1573_v45 = vadd.f32 %v1572_v44, %v1571_v48 }
 0x209   : > { %1522 = vst.msk [vmem:[%s2800_s20 + $0xc8] sm:$0xff] %vm953_vm0, %v1469_v39  ;;  %v1623_v20 = vmul.f32 %v1469_v39, %v1469_v39  ;;  %v1578_v26 = vsel %vm953_vm0, %v1469_v39, 0.0 }
 0x20a   : > { %v1471_v12 = vpop.f32.mrf.mxu1  ;;  %v1674_v60 = vadd.f32 %v1673_v5, %v1672_v36  ;;  %v1575_v25 = vadd.f32 %v1574_v27, %v1573_v45 }
 0x20b   : > { %v1679_v4 = vsel %vm953_vm0, %v1623_v20, 0.0 }
 0x20c   : > { %v1676_v53 = vadd.f32 %v1675_v49, %v1674_v60  ;;  %v1577_v23 = vadd.f32 %v1576_v55, %v1575_v25 }
 0x20e   : > { %v1678_v61 = vadd.f32 %v1677_v57, %v1676_v53  ;;  %v1579_v1 = vadd.f32 %v1578_v26, %v1577_v23 }
 0x210   : > { %v1680_v40 = vadd.f32 %v1679_v4, %v1678_v61 }
 0x211   : > { %v1474_v59 = vpop.f32.mrf.mxu1 }
 0x212   : > { %1523 = vst.msk [vmem:[%s2800_s20 + $0xd0] sm:$0xff] %vm953_vm0, %v1474_v59  ;;  %v1624_v58 = vmul.f32 %v1474_v59, %v1474_v59  ;;  %v1580_v62 = vsel %vm953_vm0, %v1474_v59, 0.0 }
 0x213   : > { %v1476_v41 = vpop.f32.mrf.mxu1  ;;  %v1581_v11 = vadd.f32 %v1580_v62, %v1579_v1 }
 0x214   : > { %v1681_v2 = vsel %vm953_vm0, %v1624_v58, 0.0 }
 0x215   : > { %v1477_v42 = vpop.f32.mrf.mxu1  ;;  %v1682_v54 = vadd.f32 %v1681_v2, %v1680_v40 }
 0x216   : > { %1524 = vst.msk [vmem:[%s2800_s20 + $0xd8] sm:$0xff] %vm953_vm0, %v1477_v42  ;;  %v1625_v63 = vmul.f32 %v1477_v42, %v1477_v42  ;;  %v1582_v10 = vsel %vm953_vm0, %v1477_v42, 0.0 }
 0x217   : > { %v1479_v38 = vpop.f32.mrf.mxu1  ;;  %v1583_v17 = vadd.f32 %v1582_v10, %v1581_v11 }
 0x218   : > { %v1683_v52 = vsel %vm953_vm0, %v1625_v63, 0.0 }
 0x219   : > { %v1684_v8 = vadd.f32 %v1683_v52, %v1682_v54 }
 0x220   : > { %v1482_v51 = vpop.f32.mrf.mxu1 }
 0x221   : > { %1525 = vst.msk [vmem:[%s2800_s20 + $0xe0] sm:$0xff] %vm953_vm0, %v1482_v51  ;;  %v1626_v15 = vmul.f32 %v1482_v51, %v1482_v51  ;;  %v1584_v13 = vsel %vm953_vm0, %v1482_v51, 0.0 }
 0x222   : > { %v1484_v56 = vpop.f32.mrf.mxu1  ;;  %v1585_v18 = vadd.f32 %v1584_v13, %v1583_v17 }
 0x223   : > { %v1685_v47 = vsel %vm953_vm0, %v1626_v15, 0.0 }
 0x224   : > { %v1485_v33 = vpop.f32.mrf.mxu1  ;;  %v1686_v24 = vadd.f32 %v1685_v47, %v1684_v8 }
 0x225   : > { %1526 = vst.msk [vmem:[%s2800_s20 + $0xe8] sm:$0xff] %vm953_vm0, %v1485_v33  ;;  %v1627_v14 = vmul.f32 %v1485_v33, %v1485_v33  ;;  %v1586_v6 = vsel %vm953_vm0, %v1485_v33, 0.0 }
 0x226   : > { %v1487_v0 = vpop.f32.mrf.mxu1  ;;  %v1587_v28 = vadd.f32 %v1586_v6, %v1585_v18 }
 0x227   : > { %v1687_v3 = vsel %vm953_vm0, %v1627_v14, 0.0 }
 0x228   : > { %v1688_v29 = vadd.f32 %v1687_v3, %v1686_v24 }
 0x22d   : > { %v1490_v9 = vpop.f32.mrf.mxu1 }
 0x22e   : > { %1527 = vst.msk [vmem:[%s2800_s20 + $0xf0] sm:$0xff] %vm953_vm0, %v1490_v9  ;;  %v1588_v21 = vsel %vm953_vm0, %v1490_v9, 0.0  ;;  %v1628_v37 = vmul.f32 %v1490_v9, %v1490_v9 }
 0x22f   : > { %v1492_v16 = vpop.f32.mrf.mxu1  ;;  %v1589_v30 = vadd.f32 %v1588_v21, %v1587_v28 }
 0x230   : > { %v1689_v19 = vsel %vm953_vm0, %v1628_v37, 0.0 }
 0x231   : > { %v1493_v31 = vpop.f32.mrf.mxu1  ;;  %v1690_v48 = vadd.f32 %v1689_v19, %v1688_v29 }
 0x232   : > { %1528 = vst.msk [vmem:[%s2800_s20 + $0xf8] sm:$0xff] %vm953_vm0, %v1493_v31  ;;  %v1590_v22 = vsel %vm953_vm0, %v1493_v31, 0.0  ;;  %v1629_v32 = vmul.f32 %v1493_v31, %v1493_v31 }
 0x233   : > { %v1591_v34 = vadd.f32 %v1590_v22, %v1589_v30  ;;  %v1495_v35 = vpop.f32.mrf.mxu1 }
 0x234   : > { %v1691_v7 = vsel %vm953_vm0, %v1629_v32, 0.0 }
 0x235   : > { %v1592_v36 = vrot.slane %v1591_v34, 4  ;;  %v1692_v39 = vadd.f32 %v1691_v7, %v1690_v48 }
 0x237   : > { %v1593_v12 = vadd.f32 %v1592_v36, %v1591_v34  ;;  %v1693_v59 = vrot.slane %v1692_v39, 4 }
 0x239   : > { %v1594_v41 = vrot.slane %v1593_v12, 2  ;;  %v1694_v42 = vadd.f32 %v1693_v59, %v1692_v39 }
 0x23b   : > { %v1595_v38 = vadd.f32 %v1594_v41, %v1593_v12  ;;  %v1695_v43 = vrot.slane %v1694_v42, 2 }
 0x23d   : > { %v1596_v44 = vrot.slane %v1595_v38, 1  ;;  %v1696_v45 = vadd.f32 %v1695_v43, %v1694_v42 }
 0x23f   : > { %v1697_v5 = vrot.slane %v1696_v45, 1  ;;  %v1597_v46 = vadd.f32 %v1596_v44, %v1595_v38 }
 0x241   : > { %v1698_v60 = vadd.f32 %v1697_v5, %v1696_v45 }
 0x243   : > { %v1700_v27 = vsel %vm1699_vm7, %v1597_v46, %v1698_v60 }
 0x244   : > { %1702 = vst.msk [vmem:[%s171_s25] sm:$0x3] %vm1701_vm8, %v1700_v27 }
 0x245   : > { %2127 = shalt.err (!%p2124_p3)
}
 0x246   : > { %s2128_s10 = scalar_lea.hbm %s2991_s30, 32  ;;  %s2132_s11 = scalar_lea.hbm %s3029_s3, 64 }
 0x247   : > { %p2129_p4 = scmp.ne.s32.totalorder %s2991_s30, %s2128_s10  ;;  %p2133_p9 = scmp.lt.s32.totalorder %s2991_s30, %s3029_s3 }
 0x248   : > { %p2134_p10 = scmp.lt.s32.totalorder %s2132_s11, %s2128_s10 }
 0x249   : > { %p2130_p7 = pnand %p2129_p4, %p2243_p5 }
 0x24a   : > { %p2135_p11 = por %p2134_p10, %p2133_p9 }
 0x24b   : > { %p2131_p8 = pneg %p2130_p7 }
 0x24d   : > { %p2136_p12 = pnand %p2135_p11, %p2131_p8 }
 0x24f   : > { %2139 = shalt.err (!%p2136_p12)
}
 0x250   : > { %2058 = dma.vmem_to_hbm [thread:$0]  (%p2243_p5), %s1726_s27, 32, %s2991_s30, %s1709_s4  }
 0x251 PF: > { %p2064_p13 = scmp.ge.s32.totalorder %s2174_s15, 2  ;;  %s1745_s26 = sand.u32 1, %s2162_s12  }
 0x252   : > { %s1746_s5 = scalar_lea.sflag [#allocation3], %s1745_s26 }
 0x253   : > { %p2061_p0 = pnand %p2064_p13, %p2247_p6 }
 0x255   : > { %p2062_p1 = pneg %p2061_p0 }
 0x257   : > { %2157 = dma.done.wait (%p2062_p1), %s1746_s5, 32  }
 0x258   : > { %2159 = vsyncadd (%p2062_p1), %s1746_s5, 4294967264  ;;  %p14_p2 = scmp.ge.s32.totalorder %s2230_s18, 4   ;;  %s3032_s12 = smov %s2166_s13 }
 0x259   : > { %s3033_s13 = smov %s2170_s14  ;;  %s3034_s14 = smov %s2241_s21 }
 0x25a   : > { %s3035_s15 = smov %s2230_s18  ;;  %16 = sbr.rel (!%p14_p2) target bundleno = 3 (0x3), region = 77 }
 0x25f   :  { %1751 = vsyncpa [#allocation3], 1 }
 0x260   :  { %1753 = vsyncpa [#allocation3 + $0x1], 1 }

</bundles_post_ra>
